<compile_context>
chip_gen: v5e
topology: v5e:2x2
jax: 0.10.0
libtpu: 0.0.40
codegen_flags: <defaults>
</compile_context>

<pallas_src>
import functools

import jax
import jax.numpy as jnp
from jax.experimental import pallas as pl
from jax.experimental.pallas import tpu as pltpu


def _resblock_kernel(xc_ref, xu_ref, xd_ref, w1_ref, b1_ref, w2_ref, b2_ref,
                     o_ref, xpad, y1pad, *, W, C, K, tile_h, res_scale,
                     compute_dtype):
    """One (batch, H-tile) grid step of the fused ResBlock.

    xc_ref : (1, tile_h, W, C)  input dtype  center input rows [r0, r0+tile_h)
    xu_ref : (1, 2P, W, C)      input dtype  rows just above the tile (halo)
    xd_ref : (1, 2P, W, C)      input dtype  rows just below the tile (halo)
    w1/w2  : (K, K*C, C)        compute_dtype  conv weights, matmul layout
    b1/b2  : (1, C)             f32
    o_ref  : (1, tile_h, W, C)
    xpad   : VMEM (tile_h+4P, W+2P, C) compute_dtype  padded input tile
    y1pad  : VMEM (tile_h+2P, W+2P, C) compute_dtype  padded mid activation
    """
    P = K // 2
    h = pl.program_id(1)
    n_h = pl.num_programs(1)
    h_ext = tile_h + 2 * P              # conv1 rows needed by conv2
    f32 = jnp.float32
    cdt = compute_dtype

    # ------------------------------------------------------------------
    # Assemble the zero-padded input tile in VMEM (compute_dtype).
    #   xpad rows <-> image rows [r0 - 2P, r0 + tile_h + 2P)
    #   xpad cols <-> image cols [-P, W + P)
    # The W-halo columns are re-zeroed each step: gating them to "first step
    # per core" is unsafe under megacore (each TC owns its own scratch), and
    # the strips are only P columns wide.
    # ------------------------------------------------------------------
    xpad[:, 0:P, :] = jnp.zeros((tile_h + 4 * P, P, C), cdt)
    xpad[:, P + W:, :] = jnp.zeros((tile_h + 4 * P, P, C), cdt)

    # top halo rows (image rows [r0 - 2P, r0))
    @pl.when(h > 0)
    def _():
        xpad[0:2 * P, P:P + W, :] = xu_ref[0].astype(cdt)

    @pl.when(h == 0)
    def _():
        xpad[0:2 * P, P:P + W, :] = jnp.zeros((2 * P, W, C), cdt)

    # center rows (image rows [r0, r0 + tile_h)) -- single cast to cdt here.
    xpad[2 * P:2 * P + tile_h, P:P + W, :] = xc_ref[0].astype(cdt)

    # bottom halo rows (image rows [r0 + tile_h, r0 + tile_h + 2P))
    @pl.when(h < n_h - 1)
    def _():
        xpad[2 * P + tile_h:, P:P + W, :] = xd_ref[0].astype(cdt)

    @pl.when(h == n_h - 1)
    def _():
        xpad[2 * P + tile_h:, P:P + W, :] = jnp.zeros((2 * P, W, C), cdt)

    # ------------------------------------------------------------------
    # conv1 (+bias, ReLU) on the extended rows [r0 - P, r0 + tile_h + P).
    # Per kh: one im2col slab (h_ext, W, K*C) -> one MXU dot (contraction K*C),
    # accumulated in f32.
    # ------------------------------------------------------------------
    acc1 = jnp.zeros((h_ext * W, C), f32)
    for kh in range(K):
        slab = jnp.concatenate(
            [xpad[kh:kh + h_ext, kw:kw + W, :] for kw in range(K)], axis=-1)
        acc1 = acc1 + jnp.dot(slab.reshape(h_ext * W, K * C), w1_ref[kh],
                              preferred_element_type=f32)
    y1 = jnp.maximum(acc1 + b1_ref[...], 0.0).reshape(h_ext, W, C)

    # Padded mid activation: zero the W-halo columns, write the center.
    y1pad[:, 0:P, :] = jnp.zeros((h_ext, P, C), cdt)
    y1pad[:, P + W:, :] = jnp.zeros((h_ext, P, C), cdt)
    y1pad[:, P:P + W, :] = y1.astype(cdt)

    # Rows of the mid activation that lie outside the image must act as
    # conv2's zero padding (NOT conv1-of-zero-padding).  Only the first and
    # last H tiles have such rows, so zero just those P rows under pl.when
    # instead of masking the whole tile with an iota compare.
    @pl.when(h == 0)
    def _():
        y1pad[0:P, :, :] = jnp.zeros((P, W + 2 * P, C), cdt)

    @pl.when(h == n_h - 1)
    def _():
        y1pad[h_ext - P:, :, :] = jnp.zeros((P, W + 2 * P, C), cdt)

    # ------------------------------------------------------------------
    # conv2 (+bias), scale, residual add with the resident center tile (f32).
    # ------------------------------------------------------------------
    acc2 = jnp.zeros((tile_h * W, C), f32)
    for kh in range(K):
        slab = jnp.concatenate(
            [y1pad[kh:kh + tile_h, kw:kw + W, :] for kw in range(K)], axis=-1)
        acc2 = acc2 + jnp.dot(slab.reshape(tile_h * W, K * C), w2_ref[kh],
                              preferred_element_type=f32)
    y2 = (acc2 + b2_ref[...]).reshape(tile_h, W, C)
    res = y2 * jnp.float32(res_scale) + xc_ref[0].astype(f32)
    o_ref[0] = res.astype(o_ref.dtype)


def _vmem_limit_bytes():
    """Per-generation scoped-VMEM limit: ~75% of physical, capped at 100 MiB.

    v5e/v6e (128 MiB physical) -> ~96-100 MiB; v7x (64 MiB per TC) -> 48 MiB.
    Falls back to the conservative v7x number if the query is unavailable.
    """
    try:
        cap = int(pltpu.get_tpu_info().vmem_capacity_bytes)
    except Exception:  # noqa: BLE001 - any failure -> conservative default
        cap = 64 * 1024 * 1024
    return min((cap * 3) // 4, 100 * 1024 * 1024)


def _pick_tile_h(H, W, C, K, N, *, in_itemsize, out_itemsize, compute_itemsize,
                 vmem_budget):
    """Largest divisor of H that is a multiple of 2P and fits the VMEM budget.

    The budget accounts for the two padded scratch buffers, the im2col slab,
    the f32 accumulator, double-buffered center input / output tiles, the
    halo blocks and the resident weights.  For batch-1 inputs, at least two
    H tiles are kept so both v7x TensorCores get work.
    """
    P = K // 2
    step = 2 * P
    if H % step != 0 or H < step:
        return H

    pad_row = (W + 2 * P) * C * compute_itemsize
    per_row = (2 * pad_row                          # xpad + y1pad rows
               + 2 * W * C * in_itemsize            # double-buffered input tile
               + 2 * W * C * out_itemsize           # double-buffered output tile
               + K * C * W * compute_itemsize       # one kh im2col slab
               + 2 * W * C * 4)                     # f32 accumulator / temps
    const = (2 * 2 * step * W * C * in_itemsize     # double-buffered halos
             + 2 * 2 * K * K * C * C * compute_itemsize  # conv1+conv2 weights
             + 4 * C * 4                            # biases
             + 6 * P * pad_row)                     # scratch halo rows
    avail = max(vmem_budget - const, per_row * step)
    cap = max(avail // per_row, step)

    # v7x megacore: with batch < 2, the parallel H axis is the only way to use
    # both TensorCores, so never fall back to a single H tile.
    if N < 2 and H // 2 >= step:
        cap = min(cap, H // 2)

    best = step
    d = step
    while d <= min(H, cap):
        if H % d == 0:
            best = d
        d += step
    return best


def resblock_pallas_nhwc(x, w1, b1, w2, b2, *, res_scale=1.0, tile_h=None,
                         compute_dtype=jnp.bfloat16, out_dtype=None,
                         vmem_limit_bytes=None):
    """NHWC entry point. x: (N, H, W, C); w: (K, K, Cin, Cout) HWIO.

    When chaining many ResBlocks (the full EDSR body), call this directly with
    out_dtype=jnp.bfloat16 and keep the tensor in bf16 NHWC across the whole
    network to avoid per-block layout transposes and halve HBM traffic.
    """
    N, H, W, C = x.shape
    K = w1.shape[0]
    P = K // 2
    assert H >= 2 * P, "image height too small for halo tiling"
    out_dtype = x.dtype if out_dtype is None else out_dtype

    vmem_limit = _vmem_limit_bytes() if vmem_limit_bytes is None else int(
        vmem_limit_bytes)

    if tile_h is None:
        tile_h = _pick_tile_h(
            H, W, C, K, N,
            in_itemsize=jnp.dtype(x.dtype).itemsize,
            out_itemsize=jnp.dtype(out_dtype).itemsize,
            compute_itemsize=jnp.dtype(compute_dtype).itemsize,
            vmem_budget=int(vmem_limit * 0.6))
    assert H % tile_h == 0, "tile_h must divide H"
    if tile_h != H:
        assert tile_h % (2 * P) == 0, "tile_h must be a multiple of 2*P"
    n_h = H // tile_h

    # Halo blocks are 2P rows tall; S maps an output-tile index to a 2P-row
    # block index, hb_max clamps the bottom halo at the image edge (the
    # clamped/padded block is only read when pl.when allows it).
    S = max(tile_h // (2 * P), 1)
    hb_max = max(pl.cdiv(H, 2 * P) - 1, 0)

    # Pre-reshape weights host-side to the matmul layout (K, K*C, C):
    # flattening (kw, cin) -> kw*C + cin matches the in-kernel slab concat.
    w1m = w1.reshape(K, K * C, C).astype(compute_dtype)
    w2m = w2.reshape(K, K * C, C).astype(compute_dtype)
    b1r = b1.reshape(1, C).astype(jnp.float32)
    b2r = b2.reshape(1, C).astype(jnp.float32)

    kernel = functools.partial(
        _resblock_kernel, W=W, C=C, K=K, tile_h=tile_h,
        res_scale=float(res_scale), compute_dtype=compute_dtype)

    x_center = pl.BlockSpec((1, tile_h, W, C), lambda n, h: (n, h, 0, 0))
    x_up = pl.BlockSpec((1, 2 * P, W, C),
                        lambda n, h: (n, jnp.maximum(h * S - 1, 0), 0, 0))
    x_down = pl.BlockSpec((1, 2 * P, W, C),
                          lambda n, h: (n, jnp.minimum((h + 1) * S, hb_max), 0, 0))
    w_spec = pl.BlockSpec((K, K * C, C), lambda n, h: (0, 0, 0))   # resident
    b_spec = pl.BlockSpec((1, C), lambda n, h: (0, 0))             # resident
    out_spec = pl.BlockSpec((1, tile_h, W, C), lambda n, h: (n, h, 0, 0))

    return pl.pallas_call(
        kernel,
        out_shape=jax.ShapeDtypeStruct((N, H, W, C), out_dtype),
        grid=(N, n_h),
        in_specs=[x_center, x_up, x_down, w_spec, b_spec, w_spec, b_spec],
        out_specs=out_spec,
        scratch_shapes=[
            pltpu.VMEM((tile_h + 4 * P, W + 2 * P, C), compute_dtype),  # xpad
            pltpu.VMEM((tile_h + 2 * P, W + 2 * P, C), compute_dtype),  # y1pad
        ],
        compiler_params=pltpu.CompilerParams(
            dimension_semantics=("parallel", "parallel"),
            vmem_limit_bytes=int(vmem_limit)),
    )(x, x, x, w1m, b1r, w2m, b2r)


def resblock_pallas(x_nchw, w1, b1, w2, b2, *, res_scale=1.0, tile_h=None,
                    compute_dtype=jnp.bfloat16):
    """PyTorch-layout entry point: x (N, C, H, W) -> (N, C, H, W)."""
    x = jnp.transpose(x_nchw, (0, 2, 3, 1))     # -> NHWC (channels on lanes)
    # TODO(synk): when chaining many ResBlocks, stay in NHWC (and bf16) and
    # call resblock_pallas_nhwc directly to avoid these per-block transposes.
    out = resblock_pallas_nhwc(x, w1, b1, w2, b2, res_scale=res_scale,
                               tile_h=tile_h, compute_dtype=compute_dtype)
    return jnp.transpose(out, (0, 3, 1, 2))


def resblock_reference(x_nchw, w1, b1, w2, b2, *, res_scale=1.0):
    """Pure-JAX f32 reference using lax conv (NCHW / OIHW, like PyTorch)."""
    w1_oihw = jnp.transpose(w1, (3, 2, 0, 1))
    w2_oihw = jnp.transpose(w2, (3, 2, 0, 1))
    dn = jax.lax.conv_dimension_numbers(x_nchw.shape, w1_oihw.shape,
                                        ("NCHW", "OIHW", "NCHW"))
    y = jax.lax.conv_general_dilated(x_nchw, w1_oihw, (1, 1), "SAME",
                                     dimension_numbers=dn,
                                     precision=jax.lax.Precision.HIGHEST)
    y = y + b1.reshape(1, -1, 1, 1)
    y = jnp.maximum(y, 0.0)
    y = jax.lax.conv_general_dilated(y, w2_oihw, (1, 1), "SAME",
                                     dimension_numbers=dn,
                                     precision=jax.lax.Precision.HIGHEST)
    y = y + b2.reshape(1, -1, 1, 1)
    return y * res_scale + x_nchw


if __name__ == "__main__":
    # Small shapes consistent with the module: n_feats=4, kernel_size=3.
    N, C, H, W, K = 2, 4, 16, 16, 3
    res_scale = 1.0

    key = jax.random.PRNGKey(0)
    kx, k1, k2, kb1, kb2 = jax.random.split(key, 5)

    x = jax.random.normal(kx, (N, C, H, W), jnp.float32)
    w1 = jax.random.normal(k1, (K, K, C, C), jnp.float32) * 0.1
    w2 = jax.random.normal(k2, (K, K, C, C), jnp.float32) * 0.1
    b1 = jax.random.normal(kb1, (C,), jnp.float32) * 0.1
    b2 = jax.random.normal(kb2, (C,), jnp.float32) * 0.1

    ref = resblock_reference(x, w1, b1, w2, b2, res_scale=res_scale)

    # 1) f32-operand path, explicit multi-tile grid (2 batch x 2 H tiles).
    out_f32 = resblock_pallas(x, w1, b1, w2, b2, res_scale=res_scale,
                              tile_h=8, compute_dtype=jnp.float32)
    out_f32 = jax.block_until_ready(out_f32)
    assert out_f32.shape == (N, C, H, W)
    assert jnp.allclose(out_f32, ref, atol=2e-2, rtol=2e-2)

    # 2) auto tile selection (VMEM-budgeted), f32 operands.
    out_auto = resblock_pallas(x, w1, b1, w2, b2, res_scale=res_scale,
                               compute_dtype=jnp.float32)
    out_auto = jax.block_until_ready(out_auto)
    assert jnp.allclose(out_auto, ref, atol=2e-2, rtol=2e-2)

    # 3) batch-1 auto path: the tile picker forces >= 2 H tiles so both v7x
    #    TensorCores get work even without a batch axis to parallelize.
    out_b1 = resblock_pallas(x[:1], w1, b1, w2, b2, res_scale=res_scale,
                             compute_dtype=jnp.float32)
    out_b1 = jax.block_until_ready(out_b1)
    assert jnp.allclose(out_b1, ref[:1], atol=2e-2, rtol=2e-2)

    # 4) default bf16-operand path (f32 accumulation & element-wise): bf16
    #    operand/scratch rounding -> looser tolerance than PyTorch f32 parity.
    out_bf16 = resblock_pallas(x, w1, b1, w2, b2, res_scale=res_scale, tile_h=8)
    out_bf16 = jax.block_until_ready(out_bf16)
    assert jnp.allclose(out_bf16, ref, atol=8e-2, rtol=8e-2)

    print("KERNEL_OK")
</pallas_src>

<mosaic_0001>
module attributes {stable_mosaic.version = 11 : i64} {
  func.func @_resblock_kernel(%arg0: i32, %arg1: i32, %arg2: memref<1x8x16x4xf32, #tpu.memory_space<vmem>>, %arg3: memref<1x2x16x4xf32, #tpu.memory_space<vmem>>, %arg4: memref<1x2x16x4xf32, #tpu.memory_space<vmem>>, %arg5: memref<3x12x4xf32, #tpu.memory_space<vmem>>, %arg6: memref<1x4xf32, #tpu.memory_space<vmem>>, %arg7: memref<3x12x4xf32, #tpu.memory_space<vmem>>, %arg8: memref<1x4xf32, #tpu.memory_space<vmem>>, %arg9: memref<1x8x16x4xf32, #tpu.memory_space<vmem>>, %arg10: memref<12x18x4xf32, #tpu.memory_space<vmem>>, %arg11: memref<10x18x4xf32, #tpu.memory_space<vmem>>) attributes {dimension_semantics = [#tpu.dimension_semantics<parallel>, #tpu.dimension_semantics<parallel>], iteration_bounds = array<i64: 2, 2>, scalar_prefetch = 0 : i64, scratch_operands = 2 : i64, tpu.core_type = #tpu.core_type<tc>, window_params = [{transform_indices = @transform_0, window_bounds = array<i64: 1, 8, 16, 4>}, {transform_indices = @transform_1, window_bounds = array<i64: 1, 2, 16, 4>}, {transform_indices = @transform_2, window_bounds = array<i64: 1, 2, 16, 4>}, {pipeline_mode = #tpu.pipeline_mode<synchronous>, transform_indices = @transform_3, window_bounds = array<i64: 3, 12, 4>}, {pipeline_mode = #tpu.pipeline_mode<synchronous>, transform_indices = @transform_4, window_bounds = array<i64: 1, 4>}, {pipeline_mode = #tpu.pipeline_mode<synchronous>, transform_indices = @transform_5, window_bounds = array<i64: 3, 12, 4>}, {pipeline_mode = #tpu.pipeline_mode<synchronous>, transform_indices = @transform_6, window_bounds = array<i64: 1, 4>}, {transform_indices = @transform_7, window_bounds = array<i64: 1, 8, 16, 4>}]} {
    %cst = arith.constant 0.000000e+00 : f32
    %0 = vector.broadcast %cst : f32 to vector<12x1x4xf32>
    %c0 = arith.constant 0 : index
    %c0_0 = arith.constant 0 : index
    %c0_1 = arith.constant 0 : index
    %1 = vector.load %arg10[%c0, %c0_0, %c0_1] : memref<12x18x4xf32, #tpu.memory_space<vmem>>, vector<12x1x4xf32>
    tpu.vector_store %arg10[%c0, %c0_0, %c0_1], %0 {strides = array<i32>} : memref<12x18x4xf32, #tpu.memory_space<vmem>>, vector<12x1x4xf32>,
    %cst_2 = arith.constant 0.000000e+00 : f32
    %2 = vector.broadcast %cst_2 : f32 to vector<12x1x4xf32>
    %c0_3 = arith.constant 0 : index
    %c17 = arith.constant 17 : index
    %c0_4 = arith.constant 0 : index
    %3 = vector.load %arg10[%c0_3, %c17, %c0_4] : memref<12x18x4xf32, #tpu.memory_space<vmem>>, vector<12x1x4xf32>
    tpu.vector_store %arg10[%c0_3, %c17, %c0_4], %2 {strides = array<i32>} : memref<12x18x4xf32, #tpu.memory_space<vmem>>, vector<12x1x4xf32>,
    %c0_i32 = arith.constant 0 : i32
    %4 = arith.cmpi sgt, %arg1, %c0_i32 : i32
    %5 = arith.extui %4 : i1 to i32
    %c0_i32_5 = arith.constant 0 : i32
    %6 = arith.cmpi ne, %5, %c0_i32_5 : i32
    scf.if %6 {
      %c0_125 = arith.constant 0 : index
      %c0_126 = arith.constant 0 : index
      %c0_127 = arith.constant 0 : index
      %c0_128 = arith.constant 0 : index
      %104 = vector.load %arg3[%c0_125, %c0_126, %c0_127, %c0_128] : memref<1x2x16x4xf32, #tpu.memory_space<vmem>>, vector<1x2x16x4xf32>
      %105 = vector.shape_cast %104 : vector<1x2x16x4xf32> to vector<2x16x4xf32>
      %c0_129 = arith.constant 0 : index
      %c1_130 = arith.constant 1 : index
      %c0_131 = arith.constant 0 : index
      %106 = vector.load %arg10[%c0_129, %c1_130, %c0_131] : memref<12x18x4xf32, #tpu.memory_space<vmem>>, vector<2x16x4xf32>
      tpu.vector_store %arg10[%c0_129, %c1_130, %c0_131], %105 {strides = array<i32>} : memref<12x18x4xf32, #tpu.memory_space<vmem>>, vector<2x16x4xf32>,
    } else {
    }
    %c0_i32_6 = arith.constant 0 : i32
    %7 = arith.cmpi eq, %arg1, %c0_i32_6 : i32
    %8 = arith.extui %7 : i1 to i32
    %c0_i32_7 = arith.constant 0 : i32
    %9 = arith.cmpi ne, %8, %c0_i32_7 : i32
    scf.if %9 {
      %cst_125 = arith.constant 0.000000e+00 : f32
      %104 = vector.broadcast %cst_125 : f32 to vector<2x16x4xf32>
      %c0_126 = arith.constant 0 : index
      %c1_127 = arith.constant 1 : index
      %c0_128 = arith.constant 0 : index
      %105 = vector.load %arg10[%c0_126, %c1_127, %c0_128] : memref<12x18x4xf32, #tpu.memory_space<vmem>>, vector<2x16x4xf32>
      tpu.vector_store %arg10[%c0_126, %c1_127, %c0_128], %104 {strides = array<i32>} : memref<12x18x4xf32, #tpu.memory_space<vmem>>, vector<2x16x4xf32>,
    } else {
    }
    %c0_8 = arith.constant 0 : index
    %c0_9 = arith.constant 0 : index
    %c0_10 = arith.constant 0 : index
    %c0_11 = arith.constant 0 : index
    %10 = vector.load %arg2[%c0_8, %c0_9, %c0_10, %c0_11] : memref<1x8x16x4xf32, #tpu.memory_space<vmem>>, vector<1x8x16x4xf32>
    %11 = vector.shape_cast %10 : vector<1x8x16x4xf32> to vector<8x16x4xf32>
    %c2 = arith.constant 2 : index
    %c1 = arith.constant 1 : index
    %c0_12 = arith.constant 0 : index
    %12 = vector.load %arg10[%c2, %c1, %c0_12] : memref<12x18x4xf32, #tpu.memory_space<vmem>>, vector<8x16x4xf32>
    tpu.vector_store %arg10[%c2, %c1, %c0_12], %11 {strides = array<i32>} : memref<12x18x4xf32, #tpu.memory_space<vmem>>, vector<8x16x4xf32>,
    %c1_i32 = arith.constant 1 : i32
    %13 = arith.cmpi slt, %arg1, %c1_i32 : i32
    %14 = arith.extui %13 : i1 to i32
    %c0_i32_13 = arith.constant 0 : i32
    %15 = arith.cmpi ne, %14, %c0_i32_13 : i32
    scf.if %15 {
      %c0_125 = arith.constant 0 : index
      %c0_126 = arith.constant 0 : index
      %c0_127 = arith.constant 0 : index
      %c0_128 = arith.constant 0 : index
      %104 = vector.load %arg4[%c0_125, %c0_126, %c0_127, %c0_128] : memref<1x2x16x4xf32, #tpu.memory_space<vmem>>, vector<1x2x16x4xf32>
      %105 = vector.shape_cast %104 : vector<1x2x16x4xf32> to vector<2x16x4xf32>
      %c10 = arith.constant 10 : index
      %c1_129 = arith.constant 1 : index
      %c0_130 = arith.constant 0 : index
      %106 = vector.load %arg10[%c10, %c1_129, %c0_130] : memref<12x18x4xf32, #tpu.memory_space<vmem>>, vector<2x16x4xf32>
      tpu.vector_store %arg10[%c10, %c1_129, %c0_130], %105 {strides = array<i32>} : memref<12x18x4xf32, #tpu.memory_space<vmem>>, vector<2x16x4xf32>,
    } else {
    }
    %c1_i32_14 = arith.constant 1 : i32
    %16 = arith.cmpi eq, %arg1, %c1_i32_14 : i32
    %17 = arith.extui %16 : i1 to i32
    %c0_i32_15 = arith.constant 0 : i32
    %18 = arith.cmpi ne, %17, %c0_i32_15 : i32
    scf.if %18 {
      %cst_125 = arith.constant 0.000000e+00 : f32
      %104 = vector.broadcast %cst_125 : f32 to vector<2x16x4xf32>
      %c10 = arith.constant 10 : index
      %c1_126 = arith.constant 1 : index
      %c0_127 = arith.constant 0 : index
      %105 = vector.load %arg10[%c10, %c1_126, %c0_127] : memref<12x18x4xf32, #tpu.memory_space<vmem>>, vector<2x16x4xf32>
      tpu.vector_store %arg10[%c10, %c1_126, %c0_127], %104 {strides = array<i32>} : memref<12x18x4xf32, #tpu.memory_space<vmem>>, vector<2x16x4xf32>,
    } else {
    }
    %cst_16 = arith.constant 0.000000e+00 : f32
    %19 = vector.broadcast %cst_16 : f32 to vector<160x4xf32>
    %c0_17 = arith.constant 0 : index
    %c0_18 = arith.constant 0 : index
    %c0_19 = arith.constant 0 : index
    %20 = vector.load %arg10[%c0_17, %c0_18, %c0_19] : memref<12x18x4xf32, #tpu.memory_space<vmem>>, vector<10x16x4xf32>
    %c0_20 = arith.constant 0 : index
    %c1_21 = arith.constant 1 : index
    %c0_22 = arith.constant 0 : index
    %21 = vector.load %arg10[%c0_20, %c1_21, %c0_22] : memref<12x18x4xf32, #tpu.memory_space<vmem>>, vector<10x16x4xf32>
    %c0_23 = arith.constant 0 : index
    %c2_24 = arith.constant 2 : index
    %c0_25 = arith.constant 0 : index
    %22 = vector.load %arg10[%c0_23, %c2_24, %c0_25] : memref<12x18x4xf32, #tpu.memory_space<vmem>>, vector<10x16x4xf32>
    %23 = tpu.concatenate %20, %21, %22 in 2 : vector<10x16x4xf32>, vector<10x16x4xf32>, vector<10x16x4xf32> -> vector<10x16x12xf32>
    %24 = vector.shape_cast %23 : vector<10x16x12xf32> to vector<160x12xf32>
    %c0_26 = arith.constant 0 : index
    %c0_27 = arith.constant 0 : index
    %c0_28 = arith.constant 0 : index
    %25 = vector.load %arg5[%c0_26, %c0_27, %c0_28] : memref<3x12x4xf32, #tpu.memory_space<vmem>>, vector<1x12x4xf32>
    %26 = vector.shape_cast %25 : vector<1x12x4xf32> to vector<12x4xf32>
    %cst_29 = arith.constant dense<0.000000e+00> : vector<160x4xf32>
    %27 = tpu.matmul %24, %26, %cst_29 {dimension_numbers = #tpu.dot_dimension_numbers<[1], [0], [0], [1], [0, 0, 1, 1], [], []>} : vector<160x12xf32>, vector<12x4xf32>, vector<160x4xf32> -> vector<160x4xf32>
    %28 = arith.addf %19, %27 : vector<160x4xf32>
    %c1_30 = arith.constant 1 : index
    %c0_31 = arith.constant 0 : index
    %c0_32 = arith.constant 0 : index
    %29 = vector.load %arg10[%c1_30, %c0_31, %c0_32] : memref<12x18x4xf32, #tpu.memory_space<vmem>>, vector<10x16x4xf32>
    %c1_33 = arith.constant 1 : index
    %c1_34 = arith.constant 1 : index
    %c0_35 = arith.constant 0 : index
    %30 = vector.load %arg10[%c1_33, %c1_34, %c0_35] : memref<12x18x4xf32, #tpu.memory_space<vmem>>, vector<10x16x4xf32>
    %c1_36 = arith.constant 1 : index
    %c2_37 = arith.constant 2 : index
    %c0_38 = arith.constant 0 : index
    %31 = vector.load %arg10[%c1_36, %c2_37, %c0_38] : memref<12x18x4xf32, #tpu.memory_space<vmem>>, vector<10x16x4xf32>
    %32 = tpu.concatenate %29, %30, %31 in 2 : vector<10x16x4xf32>, vector<10x16x4xf32>, vector<10x16x4xf32> -> vector<10x16x12xf32>
    %33 = vector.shape_cast %32 : vector<10x16x12xf32> to vector<160x12xf32>
    %c1_39 = arith.constant 1 : index
    %c0_40 = arith.constant 0 : index
    %c0_41 = arith.constant 0 : index
    %34 = vector.load %arg5[%c1_39, %c0_40, %c0_41] : memref<3x12x4xf32, #tpu.memory_space<vmem>>, vector<1x12x4xf32>
    %35 = vector.shape_cast %34 : vector<1x12x4xf32> to vector<12x4xf32>
    %cst_42 = arith.constant dense<0.000000e+00> : vector<160x4xf32>
    %36 = tpu.matmul %33, %35, %cst_42 {dimension_numbers = #tpu.dot_dimension_numbers<[1], [0], [0], [1], [0, 0, 1, 1], [], []>} : vector<160x12xf32>, vector<12x4xf32>, vector<160x4xf32> -> vector<160x4xf32>
    %37 = arith.addf %28, %36 : vector<160x4xf32>
    %c2_43 = arith.constant 2 : index
    %c0_44 = arith.constant 0 : index
    %c0_45 = arith.constant 0 : index
    %38 = vector.load %arg10[%c2_43, %c0_44, %c0_45] : memref<12x18x4xf32, #tpu.memory_space<vmem>>, vector<10x16x4xf32>
    %c2_46 = arith.constant 2 : index
    %c1_47 = arith.constant 1 : index
    %c0_48 = arith.constant 0 : index
    %39 = vector.load %arg10[%c2_46, %c1_47, %c0_48] : memref<12x18x4xf32, #tpu.memory_space<vmem>>, vector<10x16x4xf32>
    %c2_49 = arith.constant 2 : index
    %c2_50 = arith.constant 2 : index
    %c0_51 = arith.constant 0 : index
    %40 = vector.load %arg10[%c2_49, %c2_50, %c0_51] : memref<12x18x4xf32, #tpu.memory_space<vmem>>, vector<10x16x4xf32>
    %41 = tpu.concatenate %38, %39, %40 in 2 : vector<10x16x4xf32>, vector<10x16x4xf32>, vector<10x16x4xf32> -> vector<10x16x12xf32>
    %42 = vector.shape_cast %41 : vector<10x16x12xf32> to vector<160x12xf32>
    %c2_52 = arith.constant 2 : index
    %c0_53 = arith.constant 0 : index
    %c0_54 = arith.constant 0 : index
    %43 = vector.load %arg5[%c2_52, %c0_53, %c0_54] : memref<3x12x4xf32, #tpu.memory_space<vmem>>, vector<1x12x4xf32>
    %44 = vector.shape_cast %43 : vector<1x12x4xf32> to vector<12x4xf32>
    %cst_55 = arith.constant dense<0.000000e+00> : vector<160x4xf32>
    %45 = tpu.matmul %42, %44, %cst_55 {dimension_numbers = #tpu.dot_dimension_numbers<[1], [0], [0], [1], [0, 0, 1, 1], [], []>} : vector<160x12xf32>, vector<12x4xf32>, vector<160x4xf32> -> vector<160x4xf32>
    %46 = arith.addf %37, %45 : vector<160x4xf32>
    %c0_56 = arith.constant 0 : index
    %c0_57 = arith.constant 0 : index
    %47 = vector.load %arg6[%c0_56, %c0_57] : memref<1x4xf32, #tpu.memory_space<vmem>>, vector<1x4xf32>
    %48 = vector.broadcast %47 : vector<1x4xf32> to vector<160x4xf32>
    %49 = arith.addf %46, %48 : vector<160x4xf32>
    %cst_58 = arith.constant 0.000000e+00 : f32
    %50 = vector.broadcast %cst_58 : f32 to vector<160x4xf32>
    %51 = arith.maximumf %49, %50 : vector<160x4xf32>
    %52 = vector.shape_cast %51 : vector<160x4xf32> to vector<10x16x4xf32>
    %cst_59 = arith.constant 0.000000e+00 : f32
    %53 = vector.broadcast %cst_59 : f32 to vector<10x1x4xf32>
    %c0_60 = arith.constant 0 : index
    %c0_61 = arith.constant 0 : index
    %c0_62 = arith.constant 0 : index
    %54 = vector.load %arg11[%c0_60, %c0_61, %c0_62] : memref<10x18x4xf32, #tpu.memory_space<vmem>>, vector<10x1x4xf32>
    tpu.vector_store %arg11[%c0_60, %c0_61, %c0_62], %53 {strides = array<i32>} : memref<10x18x4xf32, #tpu.memory_space<vmem>>, vector<10x1x4xf32>,
    %cst_63 = arith.constant 0.000000e+00 : f32
    %55 = vector.broadcast %cst_63 : f32 to vector<10x1x4xf32>
    %c0_64 = arith.constant 0 : index
    %c17_65 = arith.constant 17 : index
    %c0_66 = arith.constant 0 : index
    %56 = vector.load %arg11[%c0_64, %c17_65, %c0_66] : memref<10x18x4xf32, #tpu.memory_space<vmem>>, vector<10x1x4xf32>
    tpu.vector_store %arg11[%c0_64, %c17_65, %c0_66], %55 {strides = array<i32>} : memref<10x18x4xf32, #tpu.memory_space<vmem>>, vector<10x1x4xf32>,
    %c0_67 = arith.constant 0 : index
    %c1_68 = arith.constant 1 : index
    %c0_69 = arith.constant 0 : index
    %57 = vector.load %arg11[%c0_67, %c1_68, %c0_69] : memref<10x18x4xf32, #tpu.memory_space<vmem>>, vector<10x16x4xf32>
    tpu.vector_store %arg11[%c0_67, %c1_68, %c0_69], %52 {strides = array<i32>} : memref<10x18x4xf32, #tpu.memory_space<vmem>>, vector<10x16x4xf32>,
    %c0_i32_70 = arith.constant 0 : i32
    %58 = arith.cmpi eq, %arg1, %c0_i32_70 : i32
    %59 = arith.extui %58 : i1 to i32
    %c0_i32_71 = arith.constant 0 : i32
    %60 = arith.cmpi ne, %59, %c0_i32_71 : i32
    scf.if %60 {
      %cst_125 = arith.constant 0.000000e+00 : f32
      %104 = vector.broadcast %cst_125 : f32 to vector<1x18x4xf32>
      %c0_126 = arith.constant 0 : index
      %c0_127 = arith.constant 0 : index
      %c0_128 = arith.constant 0 : index
      %105 = vector.load %arg11[%c0_126, %c0_127, %c0_128] : memref<10x18x4xf32, #tpu.memory_space<vmem>>, vector<1x18x4xf32>
      tpu.vector_store %arg11[%c0_126, %c0_127, %c0_128], %104 {strides = array<i32>} : memref<10x18x4xf32, #tpu.memory_space<vmem>>, vector<1x18x4xf32>,
    } else {
    }
    %c1_i32_72 = arith.constant 1 : i32
    %61 = arith.cmpi eq, %arg1, %c1_i32_72 : i32
    %62 = arith.extui %61 : i1 to i32
    %c0_i32_73 = arith.constant 0 : i32
    %63 = arith.cmpi ne, %62, %c0_i32_73 : i32
    scf.if %63 {
      %cst_125 = arith.constant 0.000000e+00 : f32
      %104 = vector.broadcast %cst_125 : f32 to vector<1x18x4xf32>
      %c9 = arith.constant 9 : index
      %c0_126 = arith.constant 0 : index
      %c0_127 = arith.constant 0 : index
      %105 = vector.load %arg11[%c9, %c0_126, %c0_127] : memref<10x18x4xf32, #tpu.memory_space<vmem>>, vector<1x18x4xf32>
      tpu.vector_store %arg11[%c9, %c0_126, %c0_127], %104 {strides = array<i32>} : memref<10x18x4xf32, #tpu.memory_space<vmem>>, vector<1x18x4xf32>,
    } else {
    }
    %cst_74 = arith.constant 0.000000e+00 : f32
    %64 = vector.broadcast %cst_74 : f32 to vector<128x4xf32>
    %c0_75 = arith.constant 0 : index
    %c0_76 = arith.constant 0 : index
    %c0_77 = arith.constant 0 : index
    %65 = vector.load %arg11[%c0_75, %c0_76, %c0_77] : memref<10x18x4xf32, #tpu.memory_space<vmem>>, vector<8x16x4xf32>
    %c0_78 = arith.constant 0 : index
    %c1_79 = arith.constant 1 : index
    %c0_80 = arith.constant 0 : index
    %66 = vector.load %arg11[%c0_78, %c1_79, %c0_80] : memref<10x18x4xf32, #tpu.memory_space<vmem>>, vector<8x16x4xf32>
    %c0_81 = arith.constant 0 : index
    %c2_82 = arith.constant 2 : index
    %c0_83 = arith.constant 0 : index
    %67 = vector.load %arg11[%c0_81, %c2_82, %c0_83] : memref<10x18x4xf32, #tpu.memory_space<vmem>>, vector<8x16x4xf32>
    %68 = tpu.concatenate %65, %66, %67 in 2 : vector<8x16x4xf32>, vector<8x16x4xf32>, vector<8x16x4xf32> -> vector<8x16x12xf32>
    %69 = vector.shape_cast %68 : vector<8x16x12xf32> to vector<128x12xf32>
    %c0_84 = arith.constant 0 : index
    %c0_85 = arith.constant 0 : index
    %c0_86 = arith.constant 0 : index
    %70 = vector.load %arg7[%c0_84, %c0_85, %c0_86] : memref<3x12x4xf32, #tpu.memory_space<vmem>>, vector<1x12x4xf32>
    %71 = vector.shape_cast %70 : vector<1x12x4xf32> to vector<12x4xf32>
    %cst_87 = arith.constant dense<0.000000e+00> : vector<128x4xf32>
    %72 = tpu.matmul %69, %71, %cst_87 {dimension_numbers = #tpu.dot_dimension_numbers<[1], [0], [0], [1], [0, 0, 1, 1], [], []>} : vector<128x12xf32>, vector<12x4xf32>, vector<128x4xf32> -> vector<128x4xf32>
    %73 = arith.addf %64, %72 : vector<128x4xf32>
    %c1_88 = arith.constant 1 : index
    %c0_89 = arith.constant 0 : index
    %c0_90 = arith.constant 0 : index
    %74 = vector.load %arg11[%c1_88, %c0_89, %c0_90] : memref<10x18x4xf32, #tpu.memory_space<vmem>>, vector<8x16x4xf32>
    %c1_91 = arith.constant 1 : index
    %c1_92 = arith.constant 1 : index
    %c0_93 = arith.constant 0 : index
    %75 = vector.load %arg11[%c1_91, %c1_92, %c0_93] : memref<10x18x4xf32, #tpu.memory_space<vmem>>, vector<8x16x4xf32>
    %c1_94 = arith.constant 1 : index
    %c2_95 = arith.constant 2 : index
    %c0_96 = arith.constant 0 : index
    %76 = vector.load %arg11[%c1_94, %c2_95, %c0_96] : memref<10x18x4xf32, #tpu.memory_space<vmem>>, vector<8x16x4xf32>
    %77 = tpu.concatenate %74, %75, %76 in 2 : vector<8x16x4xf32>, vector<8x16x4xf32>, vector<8x16x4xf32> -> vector<8x16x12xf32>
    %78 = vector.shape_cast %77 : vector<8x16x12xf32> to vector<128x12xf32>
    %c1_97 = arith.constant 1 : index
    %c0_98 = arith.constant 0 : index
    %c0_99 = arith.constant 0 : index
    %79 = vector.load %arg7[%c1_97, %c0_98, %c0_99] : memref<3x12x4xf32, #tpu.memory_space<vmem>>, vector<1x12x4xf32>
    %80 = vector.shape_cast %79 : vector<1x12x4xf32> to vector<12x4xf32>
    %cst_100 = arith.constant dense<0.000000e+00> : vector<128x4xf32>
    %81 = tpu.matmul %78, %80, %cst_100 {dimension_numbers = #tpu.dot_dimension_numbers<[1], [0], [0], [1], [0, 0, 1, 1], [], []>} : vector<128x12xf32>, vector<12x4xf32>, vector<128x4xf32> -> vector<128x4xf32>
    %82 = arith.addf %73, %81 : vector<128x4xf32>
    %c2_101 = arith.constant 2 : index
    %c0_102 = arith.constant 0 : index
    %c0_103 = arith.constant 0 : index
    %83 = vector.load %arg11[%c2_101, %c0_102, %c0_103] : memref<10x18x4xf32, #tpu.memory_space<vmem>>, vector<8x16x4xf32>
    %c2_104 = arith.constant 2 : index
    %c1_105 = arith.constant 1 : index
    %c0_106 = arith.constant 0 : index
    %84 = vector.load %arg11[%c2_104, %c1_105, %c0_106] : memref<10x18x4xf32, #tpu.memory_space<vmem>>, vector<8x16x4xf32>
    %c2_107 = arith.constant 2 : index
    %c2_108 = arith.constant 2 : index
    %c0_109 = arith.constant 0 : index
    %85 = vector.load %arg11[%c2_107, %c2_108, %c0_109] : memref<10x18x4xf32, #tpu.memory_space<vmem>>, vector<8x16x4xf32>
    %86 = tpu.concatenate %83, %84, %85 in 2 : vector<8x16x4xf32>, vector<8x16x4xf32>, vector<8x16x4xf32> -> vector<8x16x12xf32>
    %87 = vector.shape_cast %86 : vector<8x16x12xf32> to vector<128x12xf32>
    %c2_110 = arith.constant 2 : index
    %c0_111 = arith.constant 0 : index
    %c0_112 = arith.constant 0 : index
    %88 = vector.load %arg7[%c2_110, %c0_111, %c0_112] : memref<3x12x4xf32, #tpu.memory_space<vmem>>, vector<1x12x4xf32>
    %89 = vector.shape_cast %88 : vector<1x12x4xf32> to vector<12x4xf32>
    %cst_113 = arith.constant dense<0.000000e+00> : vector<128x4xf32>
    %90 = tpu.matmul %87, %89, %cst_113 {dimension_numbers = #tpu.dot_dimension_numbers<[1], [0], [0], [1], [0, 0, 1, 1], [], []>} : vector<128x12xf32>, vector<12x4xf32>, vector<128x4xf32> -> vector<128x4xf32>
    %91 = arith.addf %82, %90 : vector<128x4xf32>
    %c0_114 = arith.constant 0 : index
    %c0_115 = arith.constant 0 : index
    %92 = vector.load %arg8[%c0_114, %c0_115] : memref<1x4xf32, #tpu.memory_space<vmem>>, vector<1x4xf32>
    %93 = vector.broadcast %92 : vector<1x4xf32> to vector<128x4xf32>
    %94 = arith.addf %91, %93 : vector<128x4xf32>
    %95 = vector.shape_cast %94 : vector<128x4xf32> to vector<8x16x4xf32>
    %cst_116 = arith.constant 1.000000e+00 : f32
    %96 = vector.broadcast %cst_116 : f32 to vector<8x16x4xf32>
    %97 = arith.mulf %95, %96 : vector<8x16x4xf32>
    %c0_117 = arith.constant 0 : index
    %c0_118 = arith.constant 0 : index
    %c0_119 = arith.constant 0 : index
    %c0_120 = arith.constant 0 : index
    %98 = vector.load %arg2[%c0_117, %c0_118, %c0_119, %c0_120] : memref<1x8x16x4xf32, #tpu.memory_space<vmem>>, vector<1x8x16x4xf32>
    %99 = vector.shape_cast %98 : vector<1x8x16x4xf32> to vector<8x16x4xf32>
    %100 = arith.addf %97, %99 : vector<8x16x4xf32>
    %c0_121 = arith.constant 0 : index
    %c0_122 = arith.constant 0 : index
    %c0_123 = arith.constant 0 : index
    %c0_124 = arith.constant 0 : index
    %101 = vector.load %arg9[%c0_121, %c0_122, %c0_123, %c0_124] : memref<1x8x16x4xf32, #tpu.memory_space<vmem>>, vector<1x8x16x4xf32>
    %102 = vector.shape_cast %101 : vector<1x8x16x4xf32> to vector<8x16x4xf32>
    %103 = vector.shape_cast %100 : vector<8x16x4xf32> to vector<1x8x16x4xf32>
    tpu.vector_store %arg9[%c0_121, %c0_122, %c0_123, %c0_124], %103 {strides = array<i32>} : memref<1x8x16x4xf32, #tpu.memory_space<vmem>>, vector<1x8x16x4xf32>,
    return
  }
  func.func @transform_0(%arg0: i32, %arg1: i32) -> (i32, i32, i32, i32) {
    %c0_i32 = arith.constant 0 : i32
    %c0_i32_0 = arith.constant 0 : i32
    %c0_i32_1 = arith.constant 0 : i32
    return %arg0, %arg1, %c0_i32, %c0_i32_0 : i32, i32, i32, i32
  }
  func.func @transform_1(%arg0: i32, %arg1: i32) -> (i32, i32, i32, i32) {
    %c4_i32 = arith.constant 4 : i32
    %0 = arith.muli %arg1, %c4_i32 : i32
    %c1_i32 = arith.constant 1 : i32
    %1 = arith.subi %0, %c1_i32 : i32
    %c0_i32 = arith.constant 0 : i32
    %2 = arith.maxsi %1, %c0_i32 : i32
    %c0_i32_0 = arith.constant 0 : i32
    %c0_i32_1 = arith.constant 0 : i32
    %c0_i32_2 = arith.constant 0 : i32
    return %arg0, %2, %c0_i32_0, %c0_i32_1 : i32, i32, i32, i32
  }
  func.func @transform_2(%arg0: i32, %arg1: i32) -> (i32, i32, i32, i32) {
    %c1_i32 = arith.constant 1 : i32
    %0 = arith.addi %arg1, %c1_i32 : i32
    %c4_i32 = arith.constant 4 : i32
    %1 = arith.muli %0, %c4_i32 : i32
    %c7_i32 = arith.constant 7 : i32
    %2 = arith.minsi %1, %c7_i32 : i32
    %c0_i32 = arith.constant 0 : i32
    %c0_i32_0 = arith.constant 0 : i32
    %c0_i32_1 = arith.constant 0 : i32
    return %arg0, %2, %c0_i32, %c0_i32_0 : i32, i32, i32, i32
  }
  func.func @transform_3(%arg0: i32, %arg1: i32) -> (i32, i32, i32) {
    %c0_i32 = arith.constant 0 : i32
    %c0_i32_0 = arith.constant 0 : i32
    %c0_i32_1 = arith.constant 0 : i32
    %c0_i32_2 = arith.constant 0 : i32
    return %c0_i32, %c0_i32_0, %c0_i32_1 : i32, i32, i32
  }
  func.func @transform_4(%arg0: i32, %arg1: i32) -> (i32, i32) {
    %c0_i32 = arith.constant 0 : i32
    %c0_i32_0 = arith.constant 0 : i32
    %c0_i32_1 = arith.constant 0 : i32
    return %c0_i32, %c0_i32_0 : i32, i32
  }
  func.func @transform_5(%arg0: i32, %arg1: i32) -> (i32, i32, i32) {
    %c0_i32 = arith.constant 0 : i32
    %c0_i32_0 = arith.constant 0 : i32
    %c0_i32_1 = arith.constant 0 : i32
    %c0_i32_2 = arith.constant 0 : i32
    return %c0_i32, %c0_i32_0, %c0_i32_1 : i32, i32, i32
  }
  func.func @transform_6(%arg0: i32, %arg1: i32) -> (i32, i32) {
    %c0_i32 = arith.constant 0 : i32
    %c0_i32_0 = arith.constant 0 : i32
    %c0_i32_1 = arith.constant 0 : i32
    return %c0_i32, %c0_i32_0 : i32, i32
  }
  func.func @transform_7(%arg0: i32, %arg1: i32) -> (i32, i32, i32, i32) {
    %c0_i32 = arith.constant 0 : i32
    %c0_i32_0 = arith.constant 0 : i32
    %c0_i32_1 = arith.constant 0 : i32
    return %arg0, %arg1, %c0_i32, %c0_i32_0 : i32, i32, i32, i32
  }
}

</mosaic_0001>

<bundles_post_ra>
// kernel: tpu_custom_call.1
= control target key start
LH: loop header
LB: loop body
LE: loop exit
PB: predicated region body
PF: predicated region fallthrough
CT: control target
= control target key end

     0   :  { %s3406_s24 = smov 0   ;;  %s3408_s25 = smov 0   ;;  %s5026_s0 = inlined_call_operand.vmem [shape: f32[2,16,16,4], index: 0, kind: input, shape index: {}]   ;;  %s5027_s1 = inlined_call_operand.vmem [shape: f32[2,16,16,4], index: 1, kind: input, shape index: {}]   ;;  %s5028_s2 = inlined_call_operand.vmem [shape: f32[2,16,16,4], index: 2, kind: input, shape index: {}]   ;;  %s5029_s3 = inlined_call_operand.vmem [shape: f32[3,12,4], index: 3, kind: input, shape index: {}]   ;;  %s5030_s4 = inlined_call_operand.vmem [shape: f32[1,4], index: 4, kind: input, shape index: {}]   ;;  %s5031_s5 = inlined_call_operand.vmem [shape: f32[3,12,4], index: 5, kind: input, shape index: {}]   ;;  %s5032_s6 = inlined_call_operand.vmem [shape: f32[1,4], index: 6, kind: input, shape index: {}]   ;;  %s5033_s7 = inlined_call_operand.vmem [shape: f32[2,16,16,4], index: 7, kind: output, shape index: {}]  }
   0x1   :  { %s3410_s26 = smov 0   ;;  %s3412_s27 = smov 0  }
   0x2   :  { %s3414_s28 = smov 0  }
   0x3 LB: > { %s26_s29 = sadd.s32 1, %s3349_s26  ;;  %s29_s30 = sadd.s32 1, %s3353_s27  ;;  %s3357_s28 = sphi %s3414_s28, %s17_s28   ;;  %s3353_s27 = sphi %s3412_s27, %s5037_s27   ;;  %s3349_s26 = sphi %s3410_s26, %s5036_s26   ;;  %s3345_s25 = sphi %s3408_s25, %s5035_s25   ;;  %s3341_s24 = sphi %s3406_s24, %s5034_s24  }
   0x4   : > { %p27_p0 = scmp.ge.s32.totalorder %s26_s29, 2  ;;  %p3108_p1 = scmp.ge.s32.totalorder %s3357_s28, 1 }
   0x5   : > { %p327_p2 = scmp.lt.s32.totalorder %s3357_s28, 5 }
   0x6   : > { %s5039_s29 = smov (%p27_p0, %s26_s29), 0  ;;  %s5041_s30 = smov (!%p27_p0, %s29_s30), %s3353_s27 }
   0x7   : > { %p328_p3 = pnand %p3108_p1, %p327_p2  ;;  %p31_p4 = scmp.ge.s32.totalorder %s5041_s30, 2 }
   0x8   : > { %s3109_s8 = sshll.u32 (!%p328_p3), %s3341_s24, 3  ;;  %p398_p5 = scmp.lt.s32.totalorder (!%p328_p3), %s3345_s25, 1 }
   0x9   : > { %s5043_s30 = smov (%p31_p4, %s5041_s30), 0  ;;  %331 = sbr.rel (%p328_p3) target bundleno = 1175 (0x497), region = 48 }
   0xa   : > { %p400_p6 = scmp.lt.s32.totalorder (!%p328_p3), %s3109_s8, 15  ;;  %s3113_s9 = sshll.u32 (!%p328_p3), %s3341_s24, 2 }
   0xb   : > { %s3114_s11 = sadd.s32 (!%p328_p3), 4294967295, %s3113_s9  ;;  %s3263_s14 = sadd.s32 (!%p328_p3), 4, %s3113_s9 }
   0xc   : > { %p410_p7 = scmp.gt.s32.totalorder (!%p328_p3), %s3114_s11, 0  ;;  %p429_p8 = scmp.lt.s32.totalorder (!%p328_p3), %s3263_s14, 7 }
   0xd   : > { %p3128_p11 = scmp.le.s32.totalorder (!%p328_p3), %s3341_s24, 0 }
   0xe   : > { %vm457_vm0 = vcmask 24576   ;;  %v3359_v0 = vmov 0.0   ;;  %s5045_s25 = smov (!%p398_p5, %s3345_s25), 1  ;;  %s5047_s8 = smov (!%p400_p6, %s3109_s8), 15 }
   0xf   : > { %458 = vst.msk [vmem:[#allocation2] sm:$0x1] %vm457_vm0, %v3359_v0  ;;  %s3446_s10 = sshll.u32 %s5045_s25, 5  ;;  %s3110_s12 = sshll.u32 %s5047_s8, 1 }
  0x10   : > { %459 = vst.msk [vmem:[#allocation2 + $0x18] sm:$0x1] %vm457_vm0, %v3359_v0  ;;  %s404_s13 = sadd.s32 %s3446_s10, %s3110_s12  ;;  %s5049_s11 = smov (!%p410_p7, %s3114_s11), 0 }
  0x11   : > { %460 = vst.msk [vmem:[#allocation2 + $0x30] sm:$0x1] %vm457_vm0, %v3359_v0  ;;  %s3112_s15 = sshll.u32 %s404_s13, 3  ;;  %s5051_s14 = smov (!%p429_p8, %s3263_s14), 7 }
  0x12   : > { %461 = vst.msk [vmem:[#allocation2 + $0x48] sm:$0x1] %vm457_vm0, %v3359_v0  ;;  %s3460_s18 = scalar_lea.vmem %s5026_s0, %s3112_s15  ;;  %s3465_s21 = scalar_lea.vmem %s5033_s7, %s3112_s15 }
  0x13   : > { %462 = vst.msk [vmem:[#allocation2 + $0x60] sm:$0x1] %vm457_vm0, %v3359_v0  ;;  %s3115_s22 = sshll.u32 %s5049_s11, 1  ;;  %s3120_s23 = sshll.u32 %s5051_s14, 1 }
  0x14   : > { %463 = vst.msk [vmem:[#allocation2 + $0x78] sm:$0x1] %vm457_vm0, %v3359_v0  ;;  %p415_p9 = scmp.lt.s32.totalorder %s3115_s22, 15  ;;  %p434_p10 = scmp.lt.s32.totalorder %s3120_s23, 15 }
  0x15   : > { %464 = vst.msk [vmem:[#allocation2 + $0x90] sm:$0x1] %vm457_vm0, %v3359_v0 }
  0x16   : > { %465 = vst.msk [vmem:[#allocation2 + $0xa8] sm:$0x1] %vm457_vm0, %v3359_v0  ;;  %s5053_s22 = smov (!%p415_p9, %s3115_s22), 15  ;;  %s5055_s23 = smov (!%p434_p10, %s3120_s23), 15 }
  0x17   : > { %466 = vst.msk [vmem:[#allocation2 + $0xc0] sm:$0x1] %vm457_vm0, %v3359_v0  ;;  %s3116_s25 = sshll.u32 %s5053_s22, 1  ;;  %s3121_s9 = sshll.u32 %s5055_s23, 1 }
  0x18   : > { %467 = vst.msk [vmem:[#allocation2 + $0xd8] sm:$0x1] %vm457_vm0, %v3359_v0  ;;  %s419_s8 = sadd.s32 %s3116_s25, %s3446_s10  ;;  %s438_s12 = sadd.s32 %s3121_s9, %s3446_s10 }
  0x19   : > { %468 = vst.msk [vmem:[#allocation2 + $0xf0] sm:$0x1] %vm457_vm0, %v3359_v0  ;;  %s3118_s11 = sshll.u32 %s419_s8, 3  ;;  %s3123_s16 = sshll.u32 %s438_s12, 3 }
  0x1a   : > { %469 = vst.msk [vmem:[#allocation2 + $0x108] sm:$0x1] %vm457_vm0, %v3359_v0  ;;  %s421_s15 = scalar_lea.vmem %s5027_s1, %s3118_s11  ;;  %s3499_s20 = scalar_lea.vmem %s5028_s2, %s3123_s16 }
  0x1b   : > { %470 = vst.msk [vmem:[#allocation2 + $0x11] sm:$0x1] %vm457_vm0, %v3359_v0 }
  0x1c   : > { %471 = vst.msk [vmem:[#allocation2 + $0x29] sm:$0x1] %vm457_vm0, %v3359_v0 }
  0x1d   : > { %472 = vst.msk [vmem:[#allocation2 + $0x41] sm:$0x1] %vm457_vm0, %v3359_v0 }
  0x1e   : > { %473 = vst.msk [vmem:[#allocation2 + $0x59] sm:$0x1] %vm457_vm0, %v3359_v0 }
  0x1f   : > { %474 = vst.msk [vmem:[#allocation2 + $0x71] sm:$0x1] %vm457_vm0, %v3359_v0 }
  0x20   : > { %475 = vst.msk [vmem:[#allocation2 + $0x89] sm:$0x1] %vm457_vm0, %v3359_v0 }
  0x21   : > { %476 = vst.msk [vmem:[#allocation2 + $0xa1] sm:$0x1] %vm457_vm0, %v3359_v0 }
  0x22   : > { %477 = vst.msk [vmem:[#allocation2 + $0xb9] sm:$0x1] %vm457_vm0, %v3359_v0  ;;  %485 = sbr.rel (%p3128_p11) target bundleno = 44 (0x2c), region = 52 }
  0x23   : > { %478 = vst.msk [vmem:[#allocation2 + $0xd1] sm:$0x1] %vm457_vm0, %v3359_v0 }
  0x24   : > { %479 = vst.msk [vmem:[#allocation2 + $0xe9] sm:$0x1] %vm457_vm0, %v3359_v0 }
  0x25   : > { %480 = vst.msk [vmem:[#allocation2 + $0x101] sm:$0x1] %vm457_vm0, %v3359_v0 }
  0x26   : > { %481 = vst.msk [vmem:[#allocation2 + $0x119] sm:$0x1] %vm457_vm0, %v3359_v0 }
  0x27   : > { %v486_v1 = vld [vmem:[%s421_s15] sm:$0xff]  ;;  %vm490_vm1 = vcmask 31744   ;;  %v487_v2 = vld [vmem:[%s421_s15 + $0x8] sm:$0xff]  ;;  %v488_v3 = vld [vmem:[%s421_s15 + $0x10] sm:$0xff] }
  0x28   : > { %491 = vst.msk [vmem:[#allocation2 + $0x1] sm:$0xff] %vm490_vm1, %v486_v1  ;;  %v489_v4 = vld [vmem:[%s421_s15 + $0x18] sm:$0xff] }
  0x29   : > { %492 = vst.msk [vmem:[#allocation2 + $0x9] sm:$0xff] %vm490_vm1, %v487_v2 }
  0x2a   : > { %493 = vst.msk [vmem:[#allocation2 + $0x19] sm:$0xff] %vm490_vm1, %v488_v3 }
  0x2b   : > { %494 = vst.msk [vmem:[#allocation2 + $0x21] sm:$0xff] %vm490_vm1, %v489_v4 }
  0x2c PF: > { %p3129_p12 = scmp.ne.s32.totalorder %s3341_s24, 0 }
  0x2e   : > { %498 = sbr.rel (%p3129_p12) target bundleno = 56 (0x38), region = 56 }
  0x33   : > { %vm499_vm2 = vcmask 31744   ;;  %v3360_v5 = vmov 0.0  }
  0x34   : > { %500 = vst.msk [vmem:[#allocation2 + $0x1] sm:$0xff] %vm499_vm2, %v3360_v5 }
  0x35   : > { %501 = vst.msk [vmem:[#allocation2 + $0x9] sm:$0xff] %vm499_vm2, %v3360_v5 }
  0x36   : > { %502 = vst.msk [vmem:[#allocation2 + $0x19] sm:$0xff] %vm499_vm2, %v3360_v5 }
  0x37   : > { %503 = vst.msk [vmem:[#allocation2 + $0x21] sm:$0xff] %vm499_vm2, %v3360_v5 }
  0x38 PF: > { %v504_v6 = vld [vmem:[%s3460_s18] sm:$0xff]  ;;  %vm521_vm3 = vcmask 31744   ;;  %v505_v7 = vld [vmem:[%s3460_s18 + $0x8] sm:$0xff]  ;;  %v506_v8 = vld [vmem:[%s3460_s18 + $0x10] sm:$0xff]  ;;  %p3130_p13 = scmp.ge.s32.totalorder %s3341_s24, 1 }
  0x39   : > { %522 = vst.msk [vmem:[#allocation2 + $0x31] sm:$0xff] %vm521_vm3, %v504_v6  ;;  %v507_v9 = vld [vmem:[%s3460_s18 + $0x18] sm:$0xff]  ;;  %v508_v10 = vld [vmem:[%s3460_s18 + $0x20] sm:$0xff]  ;;  %v509_v11 = vld [vmem:[%s3460_s18 + $0x28] sm:$0xff] }
  0x3a   : > { %523 = vst.msk [vmem:[#allocation2 + $0x39] sm:$0xff] %vm521_vm3, %v505_v7  ;;  %v510_v12 = vld [vmem:[%s3460_s18 + $0x30] sm:$0xff]  ;;  %v511_v13 = vld [vmem:[%s3460_s18 + $0x38] sm:$0xff]  ;;  %v512_v14 = vld [vmem:[%s3460_s18 + $0x40] sm:$0xff] }
  0x3b   : > { %524 = vst.msk [vmem:[#allocation2 + $0x49] sm:$0xff] %vm521_vm3, %v506_v8  ;;  %v513_v15 = vld [vmem:[%s3460_s18 + $0x48] sm:$0xff]  ;;  %v514_v16 = vld [vmem:[%s3460_s18 + $0x50] sm:$0xff]  ;;  %v515_v17 = vld [vmem:[%s3460_s18 + $0x58] sm:$0xff] }
  0x3c   : > { %525 = vst.msk [vmem:[#allocation2 + $0x51] sm:$0xff] %vm521_vm3, %v507_v9  ;;  %v516_v18 = vld [vmem:[%s3460_s18 + $0x60] sm:$0xff]  ;;  %v517_v19 = vld [vmem:[%s3460_s18 + $0x68] sm:$0xff]  ;;  %v518_v20 = vld [vmem:[%s3460_s18 + $0x70] sm:$0xff] }
  0x3d   : > { %526 = vst.msk [vmem:[#allocation2 + $0x61] sm:$0xff] %vm521_vm3, %v508_v10  ;;  %v519_v21 = vld [vmem:[%s3460_s18 + $0x78] sm:$0xff] }
  0x3e   : > { %527 = vst.msk [vmem:[#allocation2 + $0x69] sm:$0xff] %vm521_vm3, %v509_v11 }
  0x3f   : > { %528 = vst.msk [vmem:[#allocation2 + $0x79] sm:$0xff] %vm521_vm3, %v510_v12 }
  0x40   : > { %529 = vst.msk [vmem:[#allocation2 + $0x81] sm:$0xff] %vm521_vm3, %v511_v13 }
  0x41   : > { %530 = vst.msk [vmem:[#allocation2 + $0x91] sm:$0xff] %vm521_vm3, %v512_v14 }
  0x42   : > { %531 = vst.msk [vmem:[#allocation2 + $0x99] sm:$0xff] %vm521_vm3, %v513_v15 }
  0x43   : > { %532 = vst.msk [vmem:[#allocation2 + $0xa9] sm:$0xff] %vm521_vm3, %v514_v16 }
  0x44   : > { %533 = vst.msk [vmem:[#allocation2 + $0xb1] sm:$0xff] %vm521_vm3, %v515_v17  ;;  %541 = sbr.rel (%p3130_p13) target bundleno = 78 (0x4e), region = 60 }
  0x45   : > { %534 = vst.msk [vmem:[#allocation2 + $0xc1] sm:$0xff] %vm521_vm3, %v516_v18 }
  0x46   : > { %535 = vst.msk [vmem:[#allocation2 + $0xc9] sm:$0xff] %vm521_vm3, %v517_v19 }
  0x47   : > { %536 = vst.msk [vmem:[#allocation2 + $0xd9] sm:$0xff] %vm521_vm3, %v518_v20 }
  0x48   : > { %537 = vst.msk [vmem:[#allocation2 + $0xe1] sm:$0xff] %vm521_vm3, %v519_v21 }
  0x49   : > { %v542_v22 = vld [vmem:[%s3499_s20] sm:$0xff]  ;;  %v543_v23 = vld [vmem:[%s3499_s20 + $0x8] sm:$0xff]  ;;  %v544_v24 = vld [vmem:[%s3499_s20 + $0x10] sm:$0xff] }
  0x4a   : > { %547 = vst.msk [vmem:[#allocation2 + $0xf1] sm:$0xff] %vm521_vm3, %v542_v22  ;;  %v545_v25 = vld [vmem:[%s3499_s20 + $0x18] sm:$0xff] }
  0x4b   : > { %548 = vst.msk [vmem:[#allocation2 + $0xf9] sm:$0xff] %vm521_vm3, %v543_v23 }
  0x4c   : > { %549 = vst.msk [vmem:[#allocation2 + $0x109] sm:$0xff] %vm521_vm3, %v544_v24 }
  0x4d   : > { %550 = vst.msk [vmem:[#allocation2 + $0x111] sm:$0xff] %vm521_vm3, %v545_v25 }
  0x4e PF: > { %p3131_p0 = scmp.ne.s32.totalorder %s3341_s24, 1 }
  0x50   : > { %554 = sbr.rel (%p3131_p0) target bundleno = 90 (0x5a), region = 64 }
  0x55   : > { %v3361_v26 = vmov 0.0  }
  0x56   : > { %556 = vst.msk [vmem:[#allocation2 + $0xf1] sm:$0xff] %vm521_vm3, %v3361_v26 }
  0x57   : > { %557 = vst.msk [vmem:[#allocation2 + $0xf9] sm:$0xff] %vm521_vm3, %v3361_v26 }
  0x58   : > { %558 = vst.msk [vmem:[#allocation2 + $0x109] sm:$0xff] %vm521_vm3, %v3361_v26 }
  0x59   : > { %559 = vst.msk [vmem:[#allocation2 + $0x111] sm:$0xff] %vm521_vm3, %v3361_v26 }
  0x5a PF: > { %v3563_v27 = vld [vmem:[#allocation2 + $0xa9] sm:$0xff]  ;;  %v3565_v28 = vld [vmem:[#allocation2 + $0x99] sm:$0xff]  ;;  %s3362_s10 = smov 4   ;;  %1836 = vst.msk [vmem:[#allocation3] sm:$0x1] %vm457_vm0, %v3359_v0  ;;  %v3573_v29 = vld [vmem:[#allocation2 + $0xb1] sm:$0xff] }
  0x5b   : > { %928 = vrot.lane.b32.xlu1 %v3563_v27, %s3362_s10  ;;  %926 = vrot.lane.b32.xlu0 %v3565_v28, %s3362_s10  ;;  %1837 = vst.msk [vmem:[#allocation3 + $0x18] sm:$0x1] %vm457_vm0, %v3359_v0  ;;  %v3585_v30 = vld [vmem:[#allocation2 + $0xaa] sm:$0xff]  ;;  %v3587_v31 = vld [vmem:[#allocation2 + $0x9a] sm:$0xff]  ;;  %v3593_v32 = vld [vmem:[#allocation2 + $0xb2] sm:$0xff]  ;;  %s3363_s22 = smov 8  }
  0x5c   : > { %930 = vrot.lane.b32.xlu2 %v3573_v29, %s3362_s10  ;;  %1838 = vst.msk [vmem:[#allocation3 + $0x30] sm:$0x1] %vm457_vm0, %v3359_v0  ;;  %v3613_v33 = vld [vmem:[#allocation2 + $0xc2] sm:$0xff]  ;;  %v3641_v37 = vld [vmem:[#allocation2 + $0xca] sm:$0xff]  ;;  %v3651_v39 = vld [vmem:[#allocation2 + $0xda] sm:$0xff]  ;;  %vm1148_vm4 = vcmask 1043456  }
  0x5d   : > { %1839 = vst.msk [vmem:[#allocation3 + $0x48] sm:$0x1] %vm457_vm0, %v3359_v0  ;;  %v3615_v34 = vld [vmem:[#allocation2 + $0xc1] sm:$0xff]  ;;  %v3621_v35 = vld [vmem:[#allocation2 + $0xc9] sm:$0xff]  ;;  %v3639_v36 = vld [vmem:[#allocation2 + $0xf1] sm:$0xff]  ;;  %vm1087_vm5 = vcmask 97280  }
  0x5e   : > { %1840 = vst.msk [vmem:[#allocation3 + $0x60] sm:$0x1] %vm457_vm0, %v3359_v0  ;;  %v3643_v38 = vld [vmem:[#allocation2 + $0xf2] sm:$0xff]  ;;  %v3663_v42 = vld [vmem:[#allocation2 + $0xe1] sm:$0xff]  ;;  %v601_v51 = vld [vmem:[#allocation2 + $0xa] sm:$0xff]  ;;  %vm800_vm6 = vcmask 64512  }
  0x5f   : > { %1841 = vst.msk [vmem:[#allocation3 + $0x78] sm:$0x1] %vm457_vm0, %v3359_v0  ;;  %v3653_v40 = vld [vmem:[#allocation2 + $0xd9] sm:$0xff]  ;;  %v3667_v44 = vld [vmem:[#allocation2 + $0xe2] sm:$0xff]  ;;  %v3677_v46 = vld [vmem:[#allocation2 + $0x31] sm:$0xff] }
  0x60   : > { %1842 = vst.msk [vmem:[#allocation3 + $0x90] sm:$0x1] %vm457_vm0, %v3359_v0  ;;  %v3655_v41 = vld [vmem:[#allocation2 + $0xf9] sm:$0xff]  ;;  %v580_v47 = vld [vmem:[#allocation2 + $0x1] sm:$0xff]  ;;  %v581_v52 = vld [vmem:[#allocation2 + $0x9] sm:$0xff] }
  0x61   : > { %1843 = vst.msk [vmem:[#allocation3 + $0xa8] sm:$0x1] %vm457_vm0, %v3359_v0  ;;  %v3665_v43 = vld [vmem:[#allocation2 + $0xfa] sm:$0xff]  ;;  %v3675_v45 = vld [vmem:[#allocation2 + $0x32] sm:$0xff]  ;;  %v600_v49 = vld [vmem:[#allocation2 + $0x2] sm:$0xff] }
  0x62   : > { %1844 = vst.msk [vmem:[#allocation3 + $0xc0] sm:$0x1] %vm457_vm0, %v3359_v0  ;;  %v3684_v48 = vld [vmem:[#allocation2 + $0x39] sm:$0xff]  ;;  %v3693_v53 = vld [vmem:[#allocation2 + $0x49] sm:$0xff]  ;;  %v3713_v58 = vld [vmem:[#allocation2 + $0x51] sm:$0xff] }
  0x63   : > { %1008 = vrot.lane.b32.xlu1 %v3585_v30, %s3363_s22  ;;  %1006 = vrot.lane.b32.xlu0 %v3587_v31, %s3363_s22  ;;  %1845 = vst.msk [vmem:[#allocation3 + $0xd8] sm:$0x1] %vm457_vm0, %v3359_v0  ;;  %v3686_v50 = vld [vmem:[#allocation2 + $0x3a] sm:$0xff]  ;;  %v3701_v55 = vld [vmem:[#allocation2 + $0x4a] sm:$0xff]  ;;  %v3711_v57 = vld [vmem:[#allocation2 + $0x52] sm:$0xff] }
  0x64   : > { %1010 = vrot.lane.b32.xlu2 %v3593_v32, %s3363_s22  ;;  %1846 = vst.msk [vmem:[#allocation3 + $0x11] sm:$0x1] %vm457_vm0, %v3359_v0  ;;  %v3699_v54 = vld [vmem:[#allocation2 + $0x19] sm:$0xff]  ;;  %v3715_v59 = vld [vmem:[#allocation2 + $0x21] sm:$0xff]  ;;  %v3744_v2 = vld [vmem:[#allocation2 + $0x69] sm:$0xff] }
  0x65   : > { %1847 = vst.msk [vmem:[#allocation3 + $0x29] sm:$0x1] %vm457_vm0, %v3359_v0  ;;  %v3703_v56 = vld [vmem:[#allocation2 + $0x1a] sm:$0xff]  ;;  %v3725_v61 = vld [vmem:[#allocation2 + $0x22] sm:$0xff]  ;;  %v3752_v4 = vld [vmem:[#allocation2 + $0x6a] sm:$0xff] }
  0x66   : > { %1848 = vst.msk [vmem:[#allocation3 + $0x41] sm:$0x1] %vm457_vm0, %v3359_v0  ;;  %v3723_v60 = vld [vmem:[#allocation2 + $0x61] sm:$0xff]  ;;  %v3133_v63 = vld [vmem:[%s5029_s3 + $0x18] sm:$0xf] }
  0x67   : > { %1849 = vst.msk [vmem:[#allocation3 + $0x59] sm:$0x1] %vm457_vm0, %v3359_v0  ;;  %v3727_v62 = vld [vmem:[#allocation2 + $0x62] sm:$0xff]  ;;  %3264 = vmatpush.msk.msra.mxu1 %vm1148_vm4, %v3133_v63  ;;  %3265 = vmatpush.msk.msra.mxu2 %vm1148_vm4, %v3133_v63  ;;  %v3762_v6 = vld [vmem:[#allocation2 + $0x7a] sm:$0xff]  ;;  %v3790_v20 = vld [vmem:[#allocation2 + $0x91] sm:$0xff] }
  0x68   : > { %1850 = vst.msk [vmem:[#allocation3 + $0x71] sm:$0x1] %vm457_vm0, %v3359_v0  ;;  %3134 = vmatpush.msk.msra.mxu0 %vm1148_vm4, %v3133_v63  ;;  %v3764_v7 = vld [vmem:[#allocation2 + $0x79] sm:$0xff]  ;;  %v3772_v11 = vld [vmem:[#allocation2 + $0x81] sm:$0xff]  ;;  %v3821_v63 = vld [vmem:[#allocation2 + $0xf0] sm:$0xff] }
  0x69   : > { %1851 = vst.msk [vmem:[#allocation3 + $0x89] sm:$0x1] %vm457_vm0, %v3359_v0  ;;  %v3774_v12 = vld [vmem:[#allocation2 + $0x98] sm:$0xff]  ;;  %v3776_v13 = vld [vmem:[#allocation2 + $0x82] sm:$0xff] }
  0x6a   : > { %1852 = vst.msk [vmem:[#allocation3 + $0xa1] sm:$0x1] %vm457_vm0, %v3359_v0  ;;  %v3788_v19 = vld [vmem:[#allocation2 + $0xa8] sm:$0xff]  ;;  %v3176_v26 = vld [vmem:[%s5029_s3 + $0x20] sm:$0xff] }
  0x6b   : > { %1012 = vrot.lane.b32.xlu1 %v3613_v33, %s3363_s22  ;;  %932 = vrot.lane.b32.xlu0 %v3615_v34, %s3362_s10  ;;  %1853 = vst.msk [vmem:[#allocation3 + $0xb9] sm:$0x1] %vm457_vm0, %v3359_v0  ;;  %v3177_v21 = vld [vmem:[%s5029_s3 + $0x28] sm:$0xf] }
  0x6c   : > { %934 = vrot.lane.b32.xlu2 %v3621_v35, %s3362_s10  ;;  %1854 = vst.msk [vmem:[#allocation3 + $0xd1] sm:$0x1] %vm457_vm0, %v3359_v0 }
  0x6d   : > { %1855 = vst.msk [vmem:[#allocation3 + $0xe9] sm:$0x1] %vm457_vm0, %v3359_v0  ;;  %v3132_v0 = vld [vmem:[%s5029_s3 + $0x10] sm:$0xff] }
  0x6e   : > { %3266 = vmatpush.msra.mxu1 %v3132_v0  ;;  %3267 = vmatpush.msra.mxu2 %v3132_v0 }
  0x6f   : > { %1167 = vmatpush.msra.mxu0 %v3132_v0 }
  0x70   : > { %3178 = vmatpush.msk.msrb.mxu2 %vm1148_vm4, %v3177_v21 }
  0x72   : > { %1710 = vmatpush.msrb.mxu2 %v3176_v26  ;;  %v3850_v26 = vld [vmem:[#allocation2 + $0xc8] sm:$0xff] }
  0x73   : > { %940 = vrot.lane.b32.xlu1 %v3639_v36, %s3362_s10  ;;  %1014 = vrot.lane.b32.xlu0 %v3641_v37, %s3363_s22 }
  0x74   : > { %1020 = vrot.lane.b32.xlu2 %v3643_v38, %s3363_s22 }
  0x7b   : > { %1016 = vrot.lane.b32.xlu1 %v3651_v39, %s3363_s22  ;;  %936 = vrot.lane.b32.xlu0 %v3653_v40, %s3362_s10 }
  0x7c   : > { %942 = vrot.lane.b32.xlu2 %v3655_v41, %s3362_s10 }
  0x83   : > { %938 = vrot.lane.b32.xlu1 %v3663_v42, %s3362_s10  ;;  %1022 = vrot.lane.b32.xlu0 %v3665_v43, %s3363_s22 }
  0x84   : > { %1018 = vrot.lane.b32.xlu2 %v3667_v44, %s3363_s22 }
  0x8b   : > { %1529 = vrot.lane.b32.xlu1 %v3675_v45, %s3363_s22  ;;  %1449 = vrot.lane.b32.xlu0 %v3677_v46, %s3362_s10 }
  0x8c   : > { %640 = vrot.lane.b32.xlu2 %v580_v47, %s3362_s10 }
  0x93   : > { %1451 = vrot.lane.b32.xlu1 %v3684_v48, %s3362_s10  ;;  %720 = vrot.lane.b32.xlu0 %v600_v49, %s3363_s22  ;;  %v3811_v49 = vld [vmem:[#allocation2 + $0xb0] sm:$0xff] }
  0x94   : > { %1531 = vrot.lane.b32.xlu2 %v3686_v50, %s3363_s22 }
  0x9b   : > { %722 = vrot.lane.b32.xlu1 %v601_v51, %s3363_s22  ;;  %642 = vrot.lane.b32.xlu0 %v581_v52, %s3362_s10  ;;  %v3813_v51 = vld [vmem:[#allocation2 + $0x92] sm:$0xff] }
  0x9c   : > { %1453 = vrot.lane.b32.xlu2 %v3693_v53, %s3362_s10 }
  0xa3   : > { %644 = vrot.lane.b32.xlu1 %v3699_v54, %s3362_s10  ;;  %1533 = vrot.lane.b32.xlu0 %v3701_v55, %s3363_s22 }
  0xa4   : > { %724 = vrot.lane.b32.xlu2 %v3703_v56, %s3363_s22 }
  0xab   : > { %1535 = vrot.lane.b32.xlu1 %v3711_v57, %s3363_s22  ;;  %1455 = vrot.lane.b32.xlu0 %v3713_v58, %s3362_s10 }
  0xac   : > { %646 = vrot.lane.b32.xlu2 %v3715_v59, %s3362_s10 }
  0xb3   : > { %1457 = vrot.lane.b32.xlu1 %v3723_v60, %s3362_s10  ;;  %726 = vrot.lane.b32.xlu0 %v3725_v61, %s3363_s22 }
  0xb4   : > { %1537 = vrot.lane.b32.xlu2 %v3727_v62, %s3363_s22 }
  0xb6   : > { %v931_v1 = vpop.permute.xlu2 %930 }
  0xb7   : > { %v1057_v52 = vsel %vm521_vm3, %v3811_v49, %v931_v1 }
  0xbb   : > { %728 = vrot.lane.b32.xlu1 %v3675_v45, %s3363_s22  ;;  %648 = vrot.lane.b32.xlu0 %v3677_v46, %s3362_s10 }
  0xbc   : > { %1459 = vrot.lane.b32.xlu2 %v3744_v2, %s3362_s10 }
  0xbe   : > { %v1011_v3 = vpop.permute.xlu2 %1010 }
  0xc3   : > { %650 = vrot.lane.b32.xlu1 %v3684_v48, %s3362_s10  ;;  %1539 = vrot.lane.b32.xlu0 %v3752_v4, %s3363_s22 }
  0xc4   : > { %730 = vrot.lane.b32.xlu2 %v3686_v50, %s3363_s22 }
  0xc6   : > { %v3760_v5 = vpop.permute.xlu2 %934 }
  0xcb   : > { %1541 = vrot.lane.b32.xlu1 %v3762_v6, %s3363_s22  ;;  %1461 = vrot.lane.b32.xlu0 %v3764_v7, %s3362_s10 }
  0xcc   : > { %652 = vrot.lane.b32.xlu2 %v3693_v53, %s3362_s10 }
  0xcd   : > { %v929_v8 = vpop.permute.xlu1 %928  ;;  %v927_v9 = vpop.permute.xlu0 %926 }
  0xce   : > { %v1021_v10 = vpop.permute.xlu2 %1020  ;;  %v1055_v14 = vsel %vm521_vm3, %v3774_v12, %v927_v9  ;;  %v1056_v22 = vsel %vm521_vm3, %v3788_v19, %v929_v8 }
  0xd3   : > { %1463 = vrot.lane.b32.xlu1 %v3772_v11, %s3362_s10  ;;  %732 = vrot.lane.b32.xlu0 %v3701_v55, %s3363_s22 }
  0xd4   : > { %1543 = vrot.lane.b32.xlu2 %v3776_v13, %s3363_s22 }
  0xd5   : > { %v1009_v15 = vpop.permute.xlu1 %1008  ;;  %v1007_v16 = vpop.permute.xlu0 %1006 }
  0xd6   : > { %v1075_v17 = vsel %vm800_vm6, %v1055_v14, %v1007_v16  ;;  %v943_v18 = vpop.permute.xlu2 %942  ;;  %v1076_v25 = vsel %vm800_vm6, %v1056_v22, %v1009_v15  ;;  %v1077_v14 = vsel %vm800_vm6, %v1057_v52, %v1011_v3  ;;  %v3830_v16 = vld [vmem:[#allocation2 + $0xc0] sm:$0xff]  ;;  %v822_v3 = vld [vmem:[%s5029_s3 + $0x8] sm:$0xf]  ;;  %v3852_v52 = vld [vmem:[#allocation2 + $0xf8] sm:$0xff] }
  0xd7   : > { %3146 = vmatmul.msk.f32.vlgmr.msra.gmra.mxu1 %vm1087_vm5, %v1075_v17  ;;  %v821_v22 = vld [vmem:[%s5029_s3] sm:$0xff] }
  0xd8   : > { %3155 = vmatpush.msk.msrb.mxu1 %vm1148_vm4, %v822_v3  ;;  %v3869_v3 = vld [vmem:[#allocation2 + $0xd8] sm:$0xff] }
  0xda   : > { %1307 = vmatpush.msrb.mxu1 %v821_v22 }
  0xdb   : > { %734 = vrot.lane.b32.xlu1 %v3711_v57, %s3363_s22  ;;  %654 = vrot.lane.b32.xlu0 %v3713_v58, %s3362_s10 }
  0xdc   : > { %1465 = vrot.lane.b32.xlu2 %v3790_v20, %s3362_s10 }
  0xdd   : > { %v1013_v23 = vpop.permute.xlu1 %1012  ;;  %v933_v24 = vpop.permute.xlu0 %932 }
  0xde   : > { %v3809_v47 = vpop.permute.xlu2 %1018  ;;  %v1058_v17 = vsel %vm521_vm3, %v3830_v16, %v933_v24 }
  0xdf   : > { %3147 = vmatmul.msk.f32.gmra.mxu1 %vm1087_vm5, %v1076_v25  ;;  %v1078_v24 = vsel %vm800_vm6, %v1058_v17, %v1013_v23  ;;  %v1063_v23 = vsel %vm521_vm3, %v3852_v52, %v943_v18 }
  0xe3   : > { %656 = vrot.lane.b32.xlu1 %v3723_v60, %s3362_s10  ;;  %1545 = vrot.lane.b32.xlu0 %v3813_v51, %s3363_s22 }
  0xe4   : > { %736 = vrot.lane.b32.xlu2 %v3727_v62, %s3363_s22 }
  0xe5   : > { %v941_v0 = vpop.permute.xlu1 %940  ;;  %v1015_v8 = vpop.permute.xlu0 %1014 }
  0xe6   : > { %v1062_v9 = vsel %vm521_vm3, %v3821_v63, %v941_v0  ;;  %v641_v15 = vpop.permute.xlu2 %640  ;;  %v1059_v0 = vsel %vm521_vm3, %v3850_v26, %v3760_v5 }
  0xe7   : > { %3148 = vmatmul.msk.f32.gmra.mxu1 %vm1087_vm5, %v1077_v14  ;;  %v1082_v1 = vsel %vm800_vm6, %v1062_v9, %v1021_v10 }
  0xe8   : > { %3153 = vmatmul.msk.f32.vlgmr.msra.gmra.mxu2 %vm1087_vm5, %v1082_v1  ;;  %v1079_v1 = vsel %vm800_vm6, %v1059_v0, %v1015_v8 }
  0xeb   : > { %1547 = vrot.lane.b32.xlu1 %v3587_v31, %s3363_s22  ;;  %1467 = vrot.lane.b32.xlu0 %v3565_v28, %s3362_s10 }
  0xec   : > { %658 = vrot.lane.b32.xlu2 %v3744_v2, %s3362_s10 }
  0xed   : > { %v1017_v10 = vpop.permute.xlu1 %1016  ;;  %v937_v21 = vpop.permute.xlu0 %936 }
  0xee   : > { %v1532_v25 = vpop.permute.xlu2 %1531  ;;  %v1060_v5 = vsel %vm521_vm3, %v3869_v3, %v937_v21 }
  0xef   : > { %3149 = vmatmul.msk.f32.gmra.mxu1 %vm1087_vm5, %v1078_v24  ;;  %v1080_v24 = vsel %vm800_vm6, %v1060_v5, %v1017_v10 }
  0xf3   : > { %738 = vrot.lane.b32.xlu1 %v3752_v4, %s3363_s22  ;;  %904 = vrot.lane.b32.xlu0 %v3699_v54, %s3362_s10 }
  0xf4   : > { %984 = vrot.lane.b32.xlu2 %v3703_v56, %s3363_s22  ;;  %v3877_v56 = vld [vmem:[#allocation2 + $0x30] sm:$0xff] }
  0xf5   : > { %v939_v9 = vpop.permute.xlu1 %938  ;;  %v1023_v14 = vpop.permute.xlu0 %1022 }
  0xf6   : > { %v1083_v17 = vsel %vm800_vm6, %v1063_v23, %v1023_v14  ;;  %v1454_v54 = vpop.permute.xlu2 %1453  ;;  %v3886_v23 = vld [vmem:[#allocation2 + $0xe0] sm:$0xff] }
  0xf7   : > { %3150 = vmatmul.msk.f32.gmra.mxu1 %vm1087_vm5, %v1079_v1  ;;  %3154 = vmatmul.msk.f32.gmra.mxu2 %vm1087_vm5, %v1083_v17  ;;  %v1061_v14 = vsel %vm521_vm3, %v3886_v23, %v939_v9  ;;  %v3895_v1 = vld [vmem:[#allocation2 + $0x38] sm:$0xff] }
  0xfb   : > { %1549 = vrot.lane.b32.xlu1 %v3585_v30, %s3363_s22  ;;  %1469 = vrot.lane.b32.xlu0 %v3563_v27, %s3362_s10 }
  0xfc   : > { %660 = vrot.lane.b32.xlu2 %v3764_v7, %s3362_s10 }
  0xfd   : > { %v1530_v18 = vpop.permute.xlu1 %1529  ;;  %v1450_v8 = vpop.permute.xlu0 %1449 }
  0xfe   : > { %v1589_v22 = vsel %vm521_vm3, %v3877_v56, %v1450_v8  ;;  %v725_v0 = vpop.permute.xlu2 %724 }
  0xff   : > { %v1609_v21 = vsel %vm800_vm6, %v1589_v22, %v1530_v18  ;;  %3151 = vmatmul.msk.f32.gmra.mxu1 %vm1087_vm5, %v1080_v24  ;;  %v1081_v18 = vsel %vm800_vm6, %v1061_v14, %v3809_v47  ;;  %v3915_v14 = vld [vmem:[#allocation2 + $0x48] sm:$0xff] }
 0x100   : > { %3179 = vmatmul.msk.f32.vlgmr.msrb.gmra.mxu2 %vm1087_vm5, %v1609_v21  ;;  %v561_v21 = vld [vmem:[#allocation2 + $0x8] sm:$0xff] }
 0x103   : > { %740 = vrot.lane.b32.xlu1 %v3762_v6, %s3363_s22  ;;  %906 = vrot.lane.b32.xlu0 %v3715_v59, %s3362_s10  ;;  %v560_v59 = vld [vmem:[#allocation2] sm:$0xff] }
 0x104   : > { %986 = vrot.lane.b32.xlu2 %v3725_v61, %s3363_s22  ;;  %v780_v61 = vsel %vm521_vm3, %v560_v59, %v641_v15  ;;  %v1591_v15 = vsel %vm521_vm3, %v3915_v14, %v1454_v54 }
 0x105   : > { %v1452_v10 = vpop.permute.xlu1 %1451  ;;  %v721_v17 = vpop.permute.xlu0 %720 }
 0x106   : > { %v1590_v5 = vsel %vm521_vm3, %v3895_v1, %v1452_v10  ;;  %v647_v8 = vpop.permute.xlu2 %646  ;;  %v801_v47 = vsel %vm800_vm6, %v780_v61, %v721_v17  ;;  %v3930_v61 = vld [vmem:[#allocation2 + $0x18] sm:$0xff] }
 0x107   : > { %3152 = vmatmul.msk.f32.gmra.mxu1 %vm1087_vm5, %v1081_v18  ;;  %v1610_v9 = vsel %vm800_vm6, %v1590_v5, %v1532_v25 }
 0x108   : > { %3180 = vmatmul.msk.f32.gmra.mxu2 %vm1087_vm5, %v1610_v9 }
 0x10b   : > { %1551 = vrot.lane.b32.xlu1 %v3593_v32, %s3363_s22  ;;  %1471 = vrot.lane.b32.xlu0 %v3573_v29, %s3362_s10 }
 0x10c   : > { %662 = vrot.lane.b32.xlu2 %v3772_v11, %s3362_s10 }
 0x10d   : > { %v723_v22 = vpop.permute.xlu1 %722  ;;  %v643_v24 = vpop.permute.xlu0 %642 }
 0x10e   : > { %v1538_v25 = vpop.permute.xlu2 %1537  ;;  %v781_v10 = vsel %vm521_vm3, %v561_v21, %v643_v24 }
 0x10f   : > { %3156 = vmatmul.msk.f32.vlgmr.msrb.gmra.mxu1 %vm1087_vm5, %v801_v47  ;;  %v802_v17 = vsel %vm800_vm6, %v781_v10, %v723_v22 }
 0x113   : > { %742 = vrot.lane.b32.xlu1 %v3776_v13, %s3363_s22  ;;  %908 = vrot.lane.b32.xlu0 %v3677_v46, %s3362_s10 }
 0x114   : > { %988 = vrot.lane.b32.xlu2 %v3675_v45, %s3363_s22  ;;  %v3938_v45 = vld [vmem:[#allocation2 + $0x50] sm:$0xff] }
 0x115   : > { %v645_v5 = vpop.permute.xlu1 %644  ;;  %v1534_v18 = vpop.permute.xlu0 %1533 }
 0x116   : > { %v1611_v9 = vsel %vm800_vm6, %v1591_v15, %v1534_v18  ;;  %v1460_v59 = vpop.permute.xlu2 %1459  ;;  %v782_v46 = vsel %vm521_vm3, %v3930_v61, %v645_v5  ;;  %v3948_v15 = vld [vmem:[#allocation2 + $0x20] sm:$0xff] }
 0x117   : > { %3157 = vmatmul.msk.f32.gmra.mxu1 %vm1087_vm5, %v802_v17  ;;  %3181 = vmatmul.msk.f32.gmra.mxu2 %vm1087_vm5, %v1611_v9  ;;  %v803_v47 = vsel %vm800_vm6, %v782_v46, %v725_v0  ;;  %v3954_v5 = vld [vmem:[#allocation2 + $0x60] sm:$0xff]  ;;  %v783_v0 = vsel %vm521_vm3, %v3948_v15, %v647_v8 }
 0x11b   : > { %1553 = vrot.lane.b32.xlu1 %v3613_v33, %s3363_s22  ;;  %1473 = vrot.lane.b32.xlu0 %v3615_v34, %s3362_s10 }
 0x11c   : > { %664 = vrot.lane.b32.xlu2 %v3790_v20, %s3362_s10 }
 0x11d   : > { %v1536_v54 = vpop.permute.xlu1 %1535  ;;  %v1456_v22 = vpop.permute.xlu0 %1455 }
 0x11e   : > { %v1592_v24 = vsel %vm521_vm3, %v3938_v45, %v1456_v22  ;;  %v731_v10 = vpop.permute.xlu2 %730 }
 0x11f   : > { %3158 = vmatmul.msk.f32.gmra.mxu1 %vm1087_vm5, %v803_v47  ;;  %v1612_v21 = vsel %vm800_vm6, %v1592_v24, %v1536_v54  ;;  %v3976_v47 = vld [vmem:[#allocation2 + $0x68] sm:$0xff] }
 0x120   : > { %3182 = vmatmul.msk.f32.gmra.mxu2 %vm1087_vm5, %v1612_v21  ;;  %v1594_v21 = vsel %vm521_vm3, %v3976_v47, %v1460_v59 }
 0x123   : > { %744 = vrot.lane.b32.xlu1 %v3813_v51, %s3363_s22  ;;  %910 = vrot.lane.b32.xlu0 %v3684_v48, %s3362_s10 }
 0x124   : > { %990 = vrot.lane.b32.xlu2 %v3686_v50, %s3363_s22 }
 0x125   : > { %v1458_v18 = vpop.permute.xlu1 %1457  ;;  %v727_v17 = vpop.permute.xlu0 %726 }
 0x126   : > { %v1593_v9 = vsel %vm521_vm3, %v3954_v5, %v1458_v18  ;;  %v804_v46 = vsel %vm800_vm6, %v783_v0, %v727_v17  ;;  %v653_v48 = vpop.permute.xlu2 %652 }
 0x127   : > { %3159 = vmatmul.msk.f32.gmra.mxu1 %vm1087_vm5, %v804_v46  ;;  %v1613_v54 = vsel %vm800_vm6, %v1593_v9, %v1538_v25 }
 0x128   : > { %3183 = vmatmul.msk.f32.gmra.mxu2 %vm1087_vm5, %v1613_v54 }
 0x12b   : > { %1555 = vrot.lane.b32.xlu1 %v3641_v37, %s3363_s22  ;;  %1475 = vrot.lane.b32.xlu0 %v3621_v35, %s3362_s10 }
 0x12c   : > { %666 = vrot.lane.b32.xlu2 %v3565_v28, %s3362_s10 }
 0x12d   : > { %v729_v8 = vpop.permute.xlu1 %728  ;;  %v649_v50 = vpop.permute.xlu0 %648 }
 0x12e   : > { %v784_v22 = vsel %vm521_vm3, %v3877_v56, %v649_v50  ;;  %v1544_v25 = vpop.permute.xlu2 %1543  ;;  %v786_v50 = vsel %vm521_vm3, %v3915_v14, %v653_v48 }
 0x12f   : > { %v805_v24 = vsel %vm800_vm6, %v784_v22, %v729_v8  ;;  %v4008_v8 = vld [vmem:[#allocation2 + $0x80] sm:$0xff] }
 0x130   : > { %3160 = vmatmul.msk.f32.gmra.mxu1 %vm1087_vm5, %v805_v24 }
 0x133   : > { %746 = vrot.lane.b32.xlu1 %v3587_v31, %s3363_s22  ;;  %912 = vrot.lane.b32.xlu0 %v3693_v53, %s3362_s10  ;;  %v3996_v53 = vld [vmem:[#allocation2 + $0x78] sm:$0xff] }
 0x134   : > { %992 = vrot.lane.b32.xlu2 %v3701_v55, %s3363_s22 }
 0x135   : > { %v651_v28 = vpop.permute.xlu1 %650  ;;  %v1540_v0 = vpop.permute.xlu0 %1539 }
 0x136   : > { %v785_v18 = vsel %vm521_vm3, %v3895_v1, %v651_v28  ;;  %v1614_v17 = vsel %vm800_vm6, %v1594_v21, %v1540_v0  ;;  %v1466_v9 = vpop.permute.xlu2 %1465 }
 0x137   : > { %3184 = vmatmul.msk.f32.gmra.mxu2 %vm1087_vm5, %v1614_v17  ;;  %v806_v31 = vsel %vm800_vm6, %v785_v18, %v731_v10  ;;  %v4030_v18 = vld [vmem:[#allocation2 + $0x90] sm:$0xff] }
 0x138   : > { %3161 = vmatmul.msk.f32.gmra.mxu1 %vm1087_vm5, %v806_v31  ;;  %v1597_v17 = vsel %vm521_vm3, %v4030_v18, %v1466_v9 }
 0x13b   : > { %1557 = vrot.lane.b32.xlu1 %v3651_v39, %s3363_s22  ;;  %1477 = vrot.lane.b32.xlu0 %v3653_v40, %s3362_s10 }
 0x13c   : > { %668 = vrot.lane.b32.xlu2 %v3563_v27, %s3362_s10 }
 0x13d   : > { %v1542_v55 = vpop.permute.xlu1 %1541  ;;  %v1462_v59 = vpop.permute.xlu0 %1461 }
 0x13e   : > { %v1595_v46 = vsel %vm521_vm3, %v3996_v53, %v1462_v59  ;;  %v737_v54 = vpop.permute.xlu2 %736 }
 0x13f   : > { %v1615_v10 = vsel %vm800_vm6, %v1595_v46, %v1542_v55 }
 0x140   : > { %3185 = vmatmul.msk.f32.gmra.mxu2 %vm1087_vm5, %v1615_v10 }
 0x143   : > { %748 = vrot.lane.b32.xlu1 %v3585_v30, %s3363_s22  ;;  %914 = vrot.lane.b32.xlu0 %v3713_v58, %s3362_s10 }
 0x144   : > { %994 = vrot.lane.b32.xlu2 %v3711_v57, %s3363_s22 }
 0x145   : > { %v1464_v27 = vpop.permute.xlu1 %1463  ;;  %v733_v22 = vpop.permute.xlu0 %732 }
 0x146   : > { %v1596_v24 = vsel %vm521_vm3, %v4008_v8, %v1464_v27  ;;  %v807_v21 = vsel %vm800_vm6, %v786_v50, %v733_v22  ;;  %v659_v58 = vpop.permute.xlu2 %658 }
 0x147   : > { %3162 = vmatmul.msk.f32.gmra.mxu1 %vm1087_vm5, %v807_v21  ;;  %v1616_v30 = vsel %vm800_vm6, %v1596_v24, %v1544_v25 }
 0x148   : > { %3186 = vmatmul.msk.f32.gmra.mxu2 %vm1087_vm5, %v1616_v30 }
 0x14b   : > { %1559 = vrot.lane.b32.xlu1 %v3667_v44, %s3363_s22  ;;  %1479 = vrot.lane.b32.xlu0 %v3663_v42, %s3362_s10 }
 0x14c   : > { %670 = vrot.lane.b32.xlu2 %v3573_v29, %s3362_s10 }
 0x14d   : > { %v735_v48 = vpop.permute.xlu1 %734  ;;  %v655_v57 = vpop.permute.xlu0 %654 }
 0x14e   : > { %v787_v28 = vsel %vm521_vm3, %v3938_v45, %v655_v57  ;;  %v985_v25 = vpop.permute.xlu2 %984 }
 0x14f   : > { %v808_v0 = vsel %vm800_vm6, %v787_v28, %v735_v48 }
 0x150   : > { %3163 = vmatmul.msk.f32.gmra.mxu1 %vm1087_vm5, %v808_v0 }
 0x153   : > { %750 = vrot.lane.b32.xlu1 %v3593_v32, %s3363_s22  ;;  %916 = vrot.lane.b32.xlu0 %v3723_v60, %s3362_s10 }
 0x154   : > { %996 = vrot.lane.b32.xlu2 %v3727_v62, %s3363_s22  ;;  %v4045_v10 = vpop.f32.mrf.mxu1 }
 0x155   : > { %v657_v29 = vpop.permute.xlu1 %656  ;;  %v1546_v31 = vpop.permute.xlu0 %1545 }
 0x156   : > { %v788_v55 = vsel %vm521_vm3, %v3954_v5, %v657_v29  ;;  %v1617_v59 = vsel %vm800_vm6, %v1597_v17, %v1546_v31  ;;  %v661_v46 = vpop.permute.xlu2 %660  ;;  %v1407_v17 = vld [vmem:[#allocation2 + $0x109] sm:$0xff] }
 0x157   : > { %3187 = vmatmul.msk.f32.gmra.mxu2 %vm1087_vm5, %v1617_v59  ;;  %v809_v32 = vsel %vm800_vm6, %v788_v55, %v737_v54 }
 0x158   : > { %3164 = vmatmul.msk.f32.gmra.mxu1 %vm1087_vm5, %v809_v32 }
 0x15b   : > { %1561 = vrot.lane.b32.xlu1 %v3643_v38, %s3363_s22  ;;  %1481 = vrot.lane.b32.xlu0 %v3639_v36, %s3362_s10  ;;  %v789_v36 = vsel %vm521_vm3, %v3976_v47, %v659_v58 }
 0x15c   : > { %672 = vrot.lane.b32.xlu2 %v3615_v34, %s3362_s10  ;;  %v4058_v27 = vpop.f32.mrf.mxu1 }
 0x15d   : > { %v1548_v60 = vpop.permute.xlu1 %1547  ;;  %v1468_v62 = vpop.permute.xlu0 %1467 }
 0x15e   : > { %v1598_v9 = vsel %vm521_vm3, %v3774_v12, %v1468_v62  ;;  %v987_v50 = vpop.permute.xlu2 %986 }
 0x15f   : > { %v1618_v54 = vsel %vm800_vm6, %v1598_v9, %v1548_v60 }
 0x160   : > { %3188 = vmatmul.msk.f32.gmra.mxu2 %vm1087_vm5, %v1618_v54  ;;  %v1408_v54 = vld [vmem:[#allocation2 + $0x111] sm:$0xff] }
 0x163   : > { %752 = vrot.lane.b32.xlu1 %v3613_v33, %s3363_s22  ;;  %918 = vrot.lane.b32.xlu0 %v3744_v2, %s3362_s10 }
 0x164   : > { %998 = vrot.lane.b32.xlu2 %v3752_v4, %s3363_s22  ;;  %v4078_v2 = vpop.f32.mrf.mxu1 }
 0x165   : > { %v739_v34 = vpop.permute.xlu1 %738  ;;  %v905_v38 = vpop.permute.xlu0 %904 }
 0x166   : > { %v1044_v22 = vsel %vm521_vm3, %v3930_v61, %v905_v38  ;;  %v810_v24 = vsel %vm800_vm6, %v789_v36, %v739_v34  ;;  %v663_v21 = vpop.permute.xlu2 %662 }
 0x167   : > { %3165 = vmatmul.msk.f32.gmra.mxu1 %vm1087_vm5, %v810_v24  ;;  %v1064_v33 = vsel %vm800_vm6, %v1044_v22, %v985_v25  ;;  %v1427_v25 = vld [vmem:[#allocation2 + $0x10a] sm:$0xff]  ;;  %v791_v32 = vsel %vm521_vm3, %v4008_v8, %v663_v21 }
 0x168   : > { %3135 = vmatmul.msk.f32.vlgmr.msra.gmra.mxu0 %vm1087_vm5, %v1064_v33 }
 0x16b   : > { %1563 = vrot.lane.b32.xlu1 %v3665_v43, %s3363_s22  ;;  %1483 = vrot.lane.b32.xlu0 %v3655_v41, %s3362_s10  ;;  %v790_v41 = vsel %vm521_vm3, %v3996_v53, %v661_v46  ;;  %v4135_v22 = vpop.f32.mrf.mxu2 }
 0x16c   : > { %674 = vrot.lane.b32.xlu2 %v3621_v35, %s3362_s10  ;;  %v4094_v35 = vpop.f32.mrf.mxu1 }
 0x16d   : > { %v1550_v4 = vpop.permute.xlu1 %1549  ;;  %v1470_v30 = vpop.permute.xlu0 %1469 }
 0x16e   : > { %v1599_v61 = vsel %vm521_vm3, %v3788_v19, %v1470_v30  ;;  %v989_v48 = vpop.permute.xlu2 %988 }
 0x16f   : > { %v1619_v58 = vsel %vm800_vm6, %v1599_v61, %v1550_v4 }
 0x170   : > { %3189 = vmatmul.msk.f32.gmra.mxu2 %vm1087_vm5, %v1619_v58 }
 0x173   : > { %754 = vrot.lane.b32.xlu1 %v3641_v37, %s3363_s22  ;;  %920 = vrot.lane.b32.xlu0 %v3764_v7, %s3362_s10 }
 0x174   : > { %1000 = vrot.lane.b32.xlu2 %v3762_v6, %s3363_s22  ;;  %v4109_v59 = vpop.f32.mrf.mxu1 }
 0x175   : > { %v741_v43 = vpop.permute.xlu1 %740  ;;  %v907_v57 = vpop.permute.xlu0 %906 }
 0x176   : > { %v1045_v28 = vsel %vm521_vm3, %v3948_v15, %v907_v57  ;;  %v811_v0 = vsel %vm800_vm6, %v790_v41, %v741_v43  ;;  %v665_v7 = vpop.permute.xlu2 %664 }
 0x177   : > { %3166 = vmatmul.msk.f32.gmra.mxu1 %vm1087_vm5, %v811_v0  ;;  %v1065_v37 = vsel %vm800_vm6, %v1045_v28, %v987_v50 }
 0x178   : > { %3136 = vmatmul.msk.f32.gmra.mxu0 %vm1087_vm5, %v1065_v37 }
 0x17a   : > { %v4153_v61 = vpop.f32.mrf.mxu2 }
 0x17b   : > { %1565 = vrot.lane.b32.xlu1 %v1427_v25, %s3363_s22  ;;  %1485 = vrot.lane.b32.xlu0 %v1407_v17, %s3362_s10 }
 0x17c   : > { %676 = vrot.lane.b32.xlu2 %v3653_v40, %s3362_s10  ;;  %v4126_v50 = vpop.f32.mrf.mxu1 }
 0x17d   : > { %v1552_v6 = vpop.permute.xlu1 %1551  ;;  %v1472_v29 = vpop.permute.xlu0 %1471 }
 0x17e   : > { %v1600_v15 = vsel %vm521_vm3, %v3811_v49, %v1472_v29  ;;  %v991_v55 = vpop.permute.xlu2 %990 }
 0x17f   : > { %v1620_v31 = vsel %vm800_vm6, %v1600_v15, %v1552_v6 }
 0x180   : > { %3190 = vmatmul.msk.f32.gmra.mxu2 %vm1087_vm5, %v1620_v31 }
 0x183   : > { %756 = vrot.lane.b32.xlu1 %v3651_v39, %s3363_s22  ;;  %922 = vrot.lane.b32.xlu0 %v3772_v11, %s3362_s10  ;;  %v1428_v11 = vld [vmem:[#allocation2 + $0x112] sm:$0xff]  ;;  %v4162_v57 = vpop.f32.mrf.mxu2 }
 0x184   : > { %1002 = vrot.lane.b32.xlu2 %v3776_v13, %s3363_s22  ;;  %v4142_v24 = vpop.f32.mrf.mxu1 }
 0x185   : > { %v743_v40 = vpop.permute.xlu1 %742  ;;  %v909_v46 = vpop.permute.xlu0 %908 }
 0x186   : > { %v1046_v60 = vsel %vm521_vm3, %v3877_v56, %v909_v46  ;;  %v812_v62 = vsel %vm800_vm6, %v791_v32, %v743_v40  ;;  %v667_v9 = vpop.permute.xlu2 %666 }
 0x187   : > { %3167 = vmatmul.msk.f32.gmra.mxu1 %vm1087_vm5, %v812_v62  ;;  %v1066_v39 = vsel %vm800_vm6, %v1046_v60, %v989_v48  ;;  %v793_v28 = vsel %vm521_vm3, %v3774_v12, %v667_v9 }
 0x188   : > { %3137 = vmatmul.msk.f32.gmra.mxu0 %vm1087_vm5, %v1066_v39 }
 0x18b   : > { %1567 = vrot.lane.b32.xlu1 %v1428_v11, %s3363_s22  ;;  %1487 = vrot.lane.b32.xlu0 %v1408_v54, %s3362_s10  ;;  %v4174_v15 = vpop.f32.mrf.mxu2 }
 0x18c   : > { %678 = vrot.lane.b32.xlu2 %v3663_v42, %s3362_s10  ;;  %v792_v42 = vsel %vm521_vm3, %v4030_v18, %v665_v7  ;;  %v4156_v41 = vpop.f32.mrf.mxu1 }
 0x18d   : > { %v1554_v13 = vpop.permute.xlu1 %1553  ;;  %v1474_v36 = vpop.permute.xlu0 %1473 }
 0x18e   : > { %v1601_v56 = vsel %vm521_vm3, %v3830_v16, %v1474_v36  ;;  %v993_v38 = vpop.permute.xlu2 %992 }
 0x18f   : > { %v1621_v34 = vsel %vm800_vm6, %v1601_v56, %v1554_v13 }
 0x190   : > { %3191 = vmatmul.msk.f32.gmra.mxu2 %vm1087_vm5, %v1621_v34 }
 0x193   : > { %758 = vrot.lane.b32.xlu1 %v3667_v44, %s3363_s22  ;;  %924 = vrot.lane.b32.xlu0 %v3790_v20, %s3362_s10 }
 0x194   : > { %1004 = vrot.lane.b32.xlu2 %v3813_v51, %s3363_s22  ;;  %v4171_v6 = vpop.f32.mrf.mxu1 }
 0x195   : > { %v745_v33 = vpop.permute.xlu1 %744  ;;  %v911_v21 = vpop.permute.xlu0 %910 }
 0x196   : > { %v1047_v4 = vsel %vm521_vm3, %v3895_v1, %v911_v21  ;;  %v813_v30 = vsel %vm800_vm6, %v792_v42, %v745_v33  ;;  %v669_v20 = vpop.permute.xlu2 %668 }
 0x197   : > { %3168 = vmatmul.msk.f32.gmra.mxu1 %vm1087_vm5, %v813_v30  ;;  %v1067_v44 = vsel %vm800_vm6, %v1047_v4, %v991_v55  ;;  %v794_v60 = vsel %vm521_vm3, %v3788_v19, %v669_v20 }
 0x198   : > { %3138 = vmatmul.msk.f32.gmra.mxu0 %vm1087_vm5, %v1067_v44 }
 0x19a   : > { %v4182_v40 = vpop.f32.mrf.mxu2 }
 0x19c   : > { %v4180_v32 = vpop.f32.mrf.mxu1 }
 0x19d   : > { %v1556_v58 = vpop.permute.xlu1 %1555  ;;  %v1476_v48 = vpop.permute.xlu0 %1475 }
 0x19e   : > { %v1602_v51 = vsel %vm521_vm3, %v3850_v26, %v1476_v48  ;;  %v995_v43 = vpop.permute.xlu2 %994 }
 0x19f   : > { %v1622_v1 = vsel %vm800_vm6, %v1602_v51, %v1556_v58 }
 0x1a0   : > { %3192 = vmatmul.msk.f32.gmra.mxu2 %vm1087_vm5, %v1622_v1 }
 0x1a3   : > { %v4194_v34 = vpop.f32.mrf.mxu2 }
 0x1a4   : > { %v4192_v13 = vpop.f32.mrf.mxu1 }
 0x1a5   : > { %v747_v0 = vpop.permute.xlu1 %746  ;;  %v913_v37 = vpop.permute.xlu0 %912 }
 0x1a6   : > { %v1048_v7 = vsel %vm521_vm3, %v3915_v14, %v913_v37  ;;  %v814_v25 = vsel %vm800_vm6, %v793_v28, %v747_v0  ;;  %v671_v29 = vpop.permute.xlu2 %670 }
 0x1a7   : > { %3169 = vmatmul.msk.f32.gmra.mxu1 %vm1087_vm5, %v814_v25  ;;  %v1068_v17 = vsel %vm800_vm6, %v1048_v7, %v993_v38  ;;  %v795_v42 = vsel %vm521_vm3, %v3811_v49, %v671_v29 }
 0x1a8   : > { %3139 = vmatmul.msk.f32.gmra.mxu0 %vm1087_vm5, %v1068_v17 }
 0x1ab   : > { %v4209_v58 = vpop.f32.mrf.mxu2 }
 0x1ad   : > { %v1558_v31 = vpop.permute.xlu1 %1557  ;;  %v1478_v12 = vpop.permute.xlu0 %1477 }
 0x1ae   : > { %v1603_v55 = vsel %vm521_vm3, %v3869_v3, %v1478_v12  ;;  %v997_v46 = vpop.permute.xlu2 %996  ;;  %v4202_v4 = vpop.f32.mrf.mxu1 }
 0x1af   : > { %v1623_v14 = vsel %vm800_vm6, %v1603_v55, %v1558_v31 }
 0x1b0   : > { %3193 = vmatmul.msk.f32.gmra.mxu2 %vm1087_vm5, %v1623_v14 }
 0x1b5   : > { %v749_v62 = vpop.permute.xlu1 %748  ;;  %v915_v39 = vpop.permute.xlu0 %914 }
 0x1b6   : > { %v1049_v9 = vsel %vm521_vm3, %v3938_v45, %v915_v39  ;;  %v815_v11 = vsel %vm800_vm6, %v794_v60, %v749_v62  ;;  %v673_v38 = vpop.permute.xlu2 %672  ;;  %v4215_v28 = vpop.f32.mrf.mxu1 }
 0x1b7   : > { %3170 = vmatmul.msk.f32.gmra.mxu1 %vm1087_vm5, %v815_v11  ;;  %v1069_v54 = vsel %vm800_vm6, %v1049_v9, %v995_v43  ;;  %v796_v37 = vsel %vm521_vm3, %v3830_v16, %v673_v38  ;;  %v4249_v38 = vld [vmem:[%s5030_s4] ss:$0 sm:$0xff] }
 0x1b8   : > { %3140 = vmatmul.msk.f32.gmra.mxu0 %vm1087_vm5, %v1069_v54 }
 0x1bd   : > { %v1560_v36 = vpop.permute.xlu1 %1559  ;;  %v1480_v56 = vpop.permute.xlu0 %1479 }
 0x1be   : > { %v1604_v19 = vsel %vm521_vm3, %v3886_v23, %v1480_v56  ;;  %v999_v48 = vpop.permute.xlu2 %998 }
 0x1bf   : > { %v1624_v45 = vsel %vm800_vm6, %v1604_v19, %v1560_v36 }
 0x1c0   : > { %3194 = vmatmul.msk.f32.gmra.mxu2 %vm1087_vm5, %v1624_v45 }
 0x1c4   : > { %v4227_v31 = vpop.f32.mrf.mxu1 }
 0x1c5   : > { %v751_v33 = vpop.permute.xlu1 %750  ;;  %v917_v21 = vpop.permute.xlu0 %916 }
 0x1c6   : > { %v1050_v30 = vsel %vm521_vm3, %v3954_v5, %v917_v21  ;;  %v816_v44 = vsel %vm800_vm6, %v795_v42, %v751_v33  ;;  %v4217_v5 = vpop.f32.mrf.mxu2  ;;  %v675_v0 = vpop.permute.xlu2 %674 }
 0x1c7   : > { %3171 = vmatmul.msk.f32.gmra.mxu1 %vm1087_vm5, %v816_v44  ;;  %v1070_v20 = vsel %vm800_vm6, %v1050_v30, %v997_v46  ;;  %v797_v39 = vsel %vm521_vm3, %v3850_v26, %v675_v0 }
 0x1c8   : > { %3141 = vmatmul.msk.f32.gmra.mxu0 %vm1087_vm5, %v1070_v20 }
 0x1cd   : > { %v1562_v51 = vpop.permute.xlu1 %1561  ;;  %v1482_v49 = vpop.permute.xlu0 %1481 }
 0x1ce   : > { %v1605_v1 = vsel %vm521_vm3, %v3821_v63, %v1482_v49  ;;  %v4230_v12 = vpop.f32.mrf.mxu2  ;;  %v1001_v55 = vpop.permute.xlu2 %1000 }
 0x1cf   : > { %v1625_v43 = vsel %vm800_vm6, %v1605_v1, %v1562_v51  ;;  %v4236_v60 = vpop.f32.mrf.mxu1 }
 0x1d0   : > { %3195 = vmatmul.msk.f32.gmra.mxu2 %vm1087_vm5, %v1625_v43 }
 0x1d5   : > { %v753_v7 = vpop.permute.xlu1 %752  ;;  %v919_v25 = vpop.permute.xlu0 %918 }
 0x1d6   : > { %v1051_v17 = vsel %vm521_vm3, %v3976_v47, %v919_v25  ;;  %v817_v29 = vsel %vm800_vm6, %v796_v37, %v753_v7  ;;  %v4238_v62 = vpop.f32.mrf.mxu2 }
 0x1d7   : > { %3172 = vmatmul.msk.f32.gmra.mxu1 %vm1087_vm5, %v817_v29  ;;  %v1071_v63 = vsel %vm800_vm6, %v1051_v17, %v999_v48  ;;  %v4256_v33 = vpop.f32.mrf.mxu1 }
 0x1d8   : > { %3142 = vmatmul.msk.f32.gmra.mxu0 %vm1087_vm5, %v1071_v63 }
 0x1dd   : > { %v1564_v14 = vpop.permute.xlu1 %1563  ;;  %v1484_v16 = vpop.permute.xlu0 %1483 }
 0x1de   : > { %v1606_v46 = vsel %vm521_vm3, %v3852_v52, %v1484_v16  ;;  %v677_v52 = vpop.permute.xlu2 %676  ;;  %v4258_v21 = vpop.f32.mrf.mxu2 }
 0x1df   : > { %v1626_v47 = vsel %vm800_vm6, %v1606_v46, %v1564_v14  ;;  %v798_v49 = vsel %vm521_vm3, %v3869_v3, %v677_v52  ;;  %v1388_v14 = vld [vmem:[#allocation2 + $0x110] sm:$0xff] }
 0x1e0   : > { %3196 = vmatmul.msk.f32.gmra.mxu2 %vm1087_vm5, %v1626_v47 }
 0x1e5   : > { %v755_v9 = vpop.permute.xlu1 %754  ;;  %v921_v11 = vpop.permute.xlu0 %920 }
 0x1e6   : > { %v818_v54 = vsel %vm800_vm6, %v797_v39, %v755_v9  ;;  %v1052_v36 = vsel %vm521_vm3, %v3996_v53, %v921_v11  ;;  %v1169_v56 = vpop.f32.mrf.mxu0  ;;  %v1387_v53 = vld [vmem:[#allocation2 + $0x108] sm:$0xff]  ;;  %v1003_v51 = vpop.permute.xlu2 %1002 }
 0x1e7   : > { %v1310_v19 = vadd.f32 %v4156_v41, %v1169_v56  ;;  %3173 = vmatmul.msk.f32.gmra.mxu1 %vm1087_vm5, %v818_v54  ;;  %v1072_v26 = vsel %vm800_vm6, %v1052_v36, %v1001_v55  ;;  %v4268_v0 = vpop.f32.mrf.mxu2 }
 0x1e8   : > { %3143 = vmatmul.msk.f32.gmra.mxu0 %vm1087_vm5, %v1072_v26 }
 0x1e9   : > { %v1772_v45 = vadd.f32 %v4162_v57, %v1310_v19  ;;  %v4264_v57 = vpop.f32.mrf.mxu1 }
 0x1eb   : > { %v1796_v42 = vadd.f32 %v4249_v38, %v1772_v45 }
 0x1ed   : > { %v1816_v41 = vmax.f32 %v1796_v42, 0.0  ;;  %v1566_v30 = vpop.permute.xlu1 %1565  ;;  %v1486_v44 = vpop.permute.xlu0 %1485 }
 0x1ee   : > { %v1607_v20 = vsel %vm521_vm3, %v1387_v53, %v1486_v44  ;;  %v679_v63 = vpop.permute.xlu2 %678 }
 0x1ef   : > { %1856 = vst.msk [vmem:[#allocation3 + $0x1] sm:$0xff] %vm521_vm3, %v1816_v41  ;;  %v1627_v48 = vsel %vm800_vm6, %v1607_v20, %v1566_v30  ;;  %v799_v54 = vsel %vm521_vm3, %v3886_v23, %v679_v63 }
 0x1f0   : > { %3197 = vmatmul.msk.f32.gmra.mxu2 %vm1087_vm5, %v1627_v48 }
 0x1f3   : > { %v4281_v39 = vpop.f32.mrf.mxu2 }
 0x1f4   : > { %v4279_v16 = vpop.f32.mrf.mxu1 }
 0x1f5   : > { %v757_v1 = vpop.permute.xlu1 %756  ;;  %v923_v43 = vpop.permute.xlu0 %922 }
 0x1f6   : > { %v819_v37 = vsel %vm800_vm6, %v798_v49, %v757_v1  ;;  %v1053_v7 = vsel %vm521_vm3, %v4008_v8, %v923_v43  ;;  %v1172_v25 = vpop.f32.mrf.mxu0  ;;  %v1005_v11 = vpop.permute.xlu2 %1004 }
 0x1f7   : > { %v1313_v17 = vadd.f32 %v4171_v6, %v1172_v25  ;;  %3174 = vmatmul.msk.f32.gmra.mxu1 %vm1087_vm5, %v819_v37  ;;  %v1073_v29 = vsel %vm800_vm6, %v1053_v7, %v1003_v51 }
 0x1f8   : > { %3144 = vmatmul.msk.f32.gmra.mxu0 %vm1087_vm5, %v1073_v29 }
 0x1f9   : > { %v1773_v3 = vadd.f32 %v4174_v15, %v1313_v17 }
 0x1fb   : > { %v1797_v55 = vadd.f32 %v4249_v38, %v1773_v3 }
 0x1fd   : > { %v1817_v46 = vmax.f32 %v1797_v55, 0.0  ;;  %v1568_v47 = vpop.permute.xlu1 %1567  ;;  %v1488_v8 = vpop.permute.xlu0 %1487 }
 0x1fe   : > { %v1608_v6 = vsel %vm521_vm3, %v1388_v14, %v1488_v8 }
 0x1ff   : > { %1857 = vst.msk [vmem:[#allocation3 + $0x9] sm:$0xff] %vm521_vm3, %v1817_v46  ;;  %v1628_v9 = vsel %vm800_vm6, %v1608_v6, %v1568_v47 }
 0x200   : > { %3198 = vmatmul.msk.f32.gmra.mxu2 %vm1087_vm5, %v1628_v9 }
 0x203   : > { %v1745_v19 = vpop.f32.mrf.mxu2 }
 0x204   : > { %v1342_v15 = vpop.f32.mrf.mxu1 }
 0x205   : > { %v1343_v36 = vadd.f32 %v1342_v15, %v4045_v10  ;;  %v759_v56 = vpop.permute.xlu1 %758  ;;  %v925_v52 = vpop.permute.xlu0 %924 }
 0x206   : > { %v820_v26 = vsel %vm800_vm6, %v799_v54, %v759_v56  ;;  %v1054_v45 = vsel %vm521_vm3, %v4030_v18, %v925_v52  ;;  %v1175_v42 = vpop.f32.mrf.mxu0 }
 0x207   : > { %v1783_v53 = vadd.f32 %v1745_v19, %v1343_v36  ;;  %v1316_v41 = vadd.f32 %v4180_v32, %v1175_v42  ;;  %3175 = vmatmul.msk.f32.gmra.mxu1 %vm1087_vm5, %v820_v26  ;;  %v1074_v30 = vsel %vm800_vm6, %v1054_v45, %v1005_v11 }
 0x208   : > { %3145 = vmatmul.msk.f32.gmra.mxu0 %vm1087_vm5, %v1074_v30 }
 0x209   : > { %v1807_v23 = vadd.f32 %v4249_v38, %v1783_v53  ;;  %v1774_v10 = vadd.f32 %v4182_v40, %v1316_v41 }
 0x20b   : > { %v1827_v44 = vmax.f32 %v1807_v23, 0.0  ;;  %v1798_v20 = vadd.f32 %v4249_v38, %v1774_v10 }
 0x20d   : > { %1867 = vst.msk [vmem:[#allocation3 + $0x81] sm:$0xff] %vm521_vm3, %v1827_v44  ;;  %v1818_v18 = vmax.f32 %v1798_v20, 0.0 }
 0x20f   : > { %1858 = vst.msk [vmem:[#allocation3 + $0x19] sm:$0xff] %vm521_vm3, %v1818_v18 }
 0x213   : > { %v1748_v49 = vpop.f32.mrf.mxu2 }
 0x214   : > { %v1345_v48 = vpop.f32.mrf.mxu1 }
 0x215   : > { %v1346_v32 = vadd.f32 %v1345_v48, %v4058_v27  ;;  %v1178_v51 = vpop.f32.mrf.mxu0 }
 0x216   : > { %v1319_v1 = vadd.f32 %v4192_v13, %v1178_v51 }
 0x217   : > { %v1784_v43 = vadd.f32 %v1748_v49, %v1346_v32 }
 0x218   : > { %v1775_v37 = vadd.f32 %v4194_v34, %v1319_v1 }
 0x219   : > { %v1808_v40 = vadd.f32 %v4249_v38, %v1784_v43 }
 0x21a   : > { %v1799_v7 = vadd.f32 %v4249_v38, %v1775_v37 }
 0x21b   : > { %v1828_v25 = vmax.f32 %v1808_v40, 0.0 }
 0x21c   : > { %v1819_v17 = vmax.f32 %v1799_v7, 0.0 }
 0x21d   : > { %1868 = vst.msk [vmem:[#allocation3 + $0x91] sm:$0xff] %vm521_vm3, %v1828_v25 }
 0x21e   : > { %1859 = vst.msk [vmem:[#allocation3 + $0x21] sm:$0xff] %vm521_vm3, %v1819_v17 }
 0x223   : > { %v1751_v63 = vpop.f32.mrf.mxu2 }
 0x224   : > { %v1348_v29 = vpop.f32.mrf.mxu1 }
 0x225   : > { %v1349_v27 = vadd.f32 %v1348_v29, %v4078_v2  ;;  %v1181_v3 = vpop.f32.mrf.mxu0 }
 0x226   : > { %v1322_v13 = vadd.f32 %v4202_v4, %v1181_v3 }
 0x227   : > { %v1785_v55 = vadd.f32 %v1751_v63, %v1349_v27 }
 0x228   : > { %v1776_v34 = vadd.f32 %v4209_v58, %v1322_v13 }
 0x229   : > { %v1809_v14 = vadd.f32 %v4249_v38, %v1785_v55 }
 0x22a   : > { %v1800_v46 = vadd.f32 %v4249_v38, %v1776_v34 }
 0x22b   : > { %v1829_v47 = vmax.f32 %v1809_v14, 0.0 }
 0x22c   : > { %v1820_v8 = vmax.f32 %v1800_v46, 0.0 }
 0x22d   : > { %1869 = vst.msk [vmem:[#allocation3 + $0x99] sm:$0xff] %vm521_vm3, %v1829_v47 }
 0x22e   : > { %1860 = vst.msk [vmem:[#allocation3 + $0x31] sm:$0xff] %vm521_vm3, %v1820_v8 }
 0x233   : > { %v1754_v15 = vpop.f32.mrf.mxu2 }
 0x234   : > { %v1351_v6 = vpop.f32.mrf.mxu1 }
 0x235   : > { %v1352_v2 = vadd.f32 %v1351_v6, %v4094_v35  ;;  %v1184_v9 = vpop.f32.mrf.mxu0 }
 0x236   : > { %v1325_v4 = vadd.f32 %v4215_v28, %v1184_v9 }
 0x237   : > { %v1786_v11 = vadd.f32 %v1754_v15, %v1352_v2 }
 0x238   : > { %v1777_v58 = vadd.f32 %v4217_v5, %v1325_v4 }
 0x239   : > { %v1810_v54 = vadd.f32 %v4249_v38, %v1786_v11 }
 0x23a   : > { %v1801_v36 = vadd.f32 %v4249_v38, %v1777_v58 }
 0x23b   : > { %v1830_v56 = vmax.f32 %v1810_v54, 0.0 }
 0x23c   : > { %v1821_v52 = vmax.f32 %v1801_v36, 0.0 }
 0x23d   : > { %1870 = vst.msk [vmem:[#allocation3 + $0xa9] sm:$0xff] %vm521_vm3, %v1830_v56 }
 0x23e   : > { %1861 = vst.msk [vmem:[#allocation3 + $0x39] sm:$0xff] %vm521_vm3, %v1821_v52 }
 0x243   : > { %v1757_v45 = vpop.f32.mrf.mxu2 }
 0x244   : > { %v1354_v19 = vpop.f32.mrf.mxu1 }
 0x245   : > { %v1355_v35 = vadd.f32 %v1354_v19, %v4109_v59  ;;  %v1187_v26 = vpop.f32.mrf.mxu0 }
 0x246   : > { %v1328_v28 = vadd.f32 %v4227_v31, %v1187_v26 }
 0x247   : > { %v1787_v42 = vadd.f32 %v1757_v45, %v1355_v35 }
 0x248   : > { %v1778_v5 = vadd.f32 %v4230_v12, %v1328_v28 }
 0x249   : > { %v1811_v53 = vadd.f32 %v4249_v38, %v1787_v42 }
 0x24a   : > { %v1802_v41 = vadd.f32 %v4249_v38, %v1778_v5 }
 0x24b   : > { %v1831_v30 = vmax.f32 %v1811_v53, 0.0 }
 0x24c   : > { %v1822_v23 = vmax.f32 %v1802_v41, 0.0 }
 0x24d   : > { %1871 = vst.msk [vmem:[#allocation3 + $0xb1] sm:$0xff] %vm521_vm3, %v1831_v30 }
 0x24e   : > { %1862 = vst.msk [vmem:[#allocation3 + $0x49] sm:$0xff] %vm521_vm3, %v1822_v23 }
 0x253   : > { %v1760_v20 = vpop.f32.mrf.mxu2 }
 0x254   : > { %v1357_v10 = vpop.f32.mrf.mxu1 }
 0x255   : > { %v1358_v59 = vadd.f32 %v1357_v10, %v4126_v50  ;;  %v1190_v44 = vpop.f32.mrf.mxu0 }
 0x256   : > { %v1331_v31 = vadd.f32 %v4236_v60, %v1190_v44 }
 0x257   : > { %v1788_v18 = vadd.f32 %v1760_v20, %v1358_v59 }
 0x258   : > { %v1779_v12 = vadd.f32 %v4238_v62, %v1331_v31 }
 0x259   : > { %v1812_v48 = vadd.f32 %v4249_v38, %v1788_v18 }
 0x25a   : > { %v1803_v32 = vadd.f32 %v4249_v38, %v1779_v12 }
 0x25b   : > { %v1832_v51 = vmax.f32 %v1812_v48, 0.0 }
 0x25c   : > { %v1823_v49 = vmax.f32 %v1803_v32, 0.0 }
 0x25d   : > { %1872 = vst.msk [vmem:[#allocation3 + $0xc1] sm:$0xff] %vm521_vm3, %v1832_v51 }
 0x25e   : > { %1863 = vst.msk [vmem:[#allocation3 + $0x51] sm:$0xff] %vm521_vm3, %v1823_v49 }
 0x263   : > { %v1763_v37 = vpop.f32.mrf.mxu2 }
 0x264   : > { %v1360_v1 = vpop.f32.mrf.mxu1 }
 0x265   : > { %v1361_v50 = vadd.f32 %v1360_v1, %v4142_v24  ;;  %v1193_v43 = vpop.f32.mrf.mxu0 }
 0x266   : > { %v1334_v60 = vadd.f32 %v4256_v33, %v1193_v43 }
 0x267   : > { %v1789_v40 = vadd.f32 %v1763_v37, %v1361_v50 }
 0x268   : > { %v1780_v62 = vadd.f32 %v4258_v21, %v1334_v60 }
 0x269   : > { %v1813_v7 = vadd.f32 %v4249_v38, %v1789_v40 }
 0x26a   : > { %v1804_v25 = vadd.f32 %v4249_v38, %v1780_v62 }
 0x26b   : > { %v1833_v17 = vmax.f32 %v1813_v7, 0.0 }
 0x26c   : > { %v1824_v29 = vmax.f32 %v1804_v25, 0.0 }
 0x26d   : > { %1873 = vst.msk [vmem:[#allocation3 + $0xc9] sm:$0xff] %vm521_vm3, %v1833_v17 }
 0x26e   : > { %1864 = vst.msk [vmem:[#allocation3 + $0x61] sm:$0xff] %vm521_vm3, %v1824_v29 }
 0x273   : > { %v1766_v63 = vpop.f32.mrf.mxu2 }
 0x274   : > { %v1363_v27 = vpop.f32.mrf.mxu1 }
 0x275   : > { %v1364_v24 = vadd.f32 %v1363_v27, %v4135_v22  ;;  %v1196_v3 = vpop.f32.mrf.mxu0 }
 0x276   : > { %v1337_v33 = vadd.f32 %v4264_v57, %v1196_v3 }
 0x277   : > { %v1790_v13 = vadd.f32 %v1766_v63, %v1364_v24 }
 0x278   : > { %v1781_v21 = vadd.f32 %v4268_v0, %v1337_v33 }
 0x279   : > { %v1814_v55 = vadd.f32 %v4249_v38, %v1790_v13 }
 0x27a   : > { %v1805_v34 = vadd.f32 %v4249_v38, %v1781_v21 }
 0x27b   : > { %v1834_v14 = vmax.f32 %v1814_v55, 0.0 }
 0x27c   : > { %v1825_v46 = vmax.f32 %v1805_v34, 0.0 }
 0x27d   : > { %1874 = vst.msk [vmem:[#allocation3 + $0xd9] sm:$0xff] %vm521_vm3, %v1834_v14 }
 0x27e   : > { %1865 = vst.msk [vmem:[#allocation3 + $0x69] sm:$0xff] %vm521_vm3, %v1825_v46 }
 0x283   : > { %v1769_v6 = vpop.f32.mrf.mxu2 }
 0x284   : > { %v1366_v47 = vpop.f32.mrf.mxu1 }
 0x285   : > { %v1367_v22 = vadd.f32 %v1366_v47, %v4153_v61  ;;  %v1199_v8 = vpop.f32.mrf.mxu0 }
 0x286   : > { %v1340_v57 = vadd.f32 %v4279_v16, %v1199_v8 }
 0x287   : > { %v1791_v2 = vadd.f32 %v1769_v6, %v1367_v22 }
 0x288   : > { %v1782_v0 = vadd.f32 %v4281_v39, %v1340_v57 }
 0x289   : > { %v1815_v9 = vadd.f32 %v4249_v38, %v1791_v2 }
 0x28a   : > { %v1806_v15 = vadd.f32 %v4249_v38, %v1782_v0  ;;  %1878 = sbr.rel (%p3129_p12) target bundleno = 659 (0x293), region = 68 }
 0x28b   : > { %v1835_v4 = vmax.f32 %v1815_v9, 0.0 }
 0x28c   : > { %v1826_v11 = vmax.f32 %v1806_v15, 0.0 }
 0x28d   : > { %1875 = vst.msk [vmem:[#allocation3 + $0xe1] sm:$0xff] %vm521_vm3, %v1835_v4 }
 0x28e   : > { %1866 = vst.msk [vmem:[#allocation3 + $0x79] sm:$0xff] %vm521_vm3, %v1826_v11 }
 0x28f   : > { %vm1881_vm7 = vcmask 25600   ;;  %v3364_v61 = vmov 0.0  }
 0x290   : > { %1879 = vst.msk [vmem:[#allocation3] sm:$0xff] %vm521_vm3, %v3364_v61 }
 0x291   : > { %1880 = vst.msk [vmem:[#allocation3 + $0x8] sm:$0xff] %vm521_vm3, %v3364_v61 }
 0x292   : > { %1882 = vst.msk [vmem:[#allocation3 + $0x10] sm:$0x3] %vm1881_vm7, %v3364_v61 }
 0x293 PF: > { %1885 = sbr.rel (%p3131_p0) target bundleno = 668 (0x29c), region = 72 }
 0x298   : > { %vm1889_vm8 = vcmask 25600   ;;  %v3365_v38 = vmov 0.0  }
 0x299   : > { %1887 = vst.msk [vmem:[#allocation3 + $0xd8] sm:$0xff] %vm521_vm3, %v3365_v38 }
 0x29a   : > { %1888 = vst.msk [vmem:[#allocation3 + $0xe0] sm:$0xff] %vm521_vm3, %v3365_v38 }
 0x29b   : > { %1890 = vst.msk [vmem:[#allocation3 + $0xe8] sm:$0x3] %vm1889_vm8, %v3365_v38 }
 0x29c PF: > { %v4366_v16 = vld [vmem:[#allocation3 + $0x69] sm:$0xff]  ;;  %v4368_v39 = vld [vmem:[#allocation3 + $0x61] sm:$0xff]  ;;  %v4370_v58 = vld [vmem:[#allocation3 + $0x51] sm:$0xff] }
 0x29d   : > { %2180 = vrot.lane.b32.xlu2 %v4366_v16, %s3362_s10  ;;  %2178 = vrot.lane.b32.xlu1 %v4368_v39, %s3362_s10  ;;  %v4378_v54 = vld [vmem:[#allocation3 + $0x6a] sm:$0xff]  ;;  %v4380_v36 = vld [vmem:[#allocation3 + $0x62] sm:$0xff]  ;;  %v4382_v56 = vld [vmem:[#allocation3 + $0x52] sm:$0xff] }
 0x29e   : > { %2176 = vrot.lane.b32.xlu0 %v4370_v58, %s3362_s10  ;;  %v4390_v52 = vld [vmem:[#allocation3 + $0x81] sm:$0xff]  ;;  %v4394_v35 = vld [vmem:[#allocation3 + $0x79] sm:$0xff]  ;;  %v4404_v45 = vld [vmem:[#allocation3 + $0x91] sm:$0xff] }
 0x29f   : > { %v4392_v19 = vld [vmem:[#allocation3 + $0x7a] sm:$0xff]  ;;  %v4402_v26 = vld [vmem:[#allocation3 + $0x92] sm:$0xff]  ;;  %v4406_v28 = vld [vmem:[#allocation3 + $0x82] sm:$0xff] }
 0x2a0   : > { %v4414_v42 = vld [vmem:[#allocation3 + $0xa9] sm:$0xff]  ;;  %v4416_v5 = vld [vmem:[#allocation3 + $0x9a] sm:$0xff]  ;;  %v4426_v41 = vld [vmem:[#allocation3 + $0xb2] sm:$0xff] }
 0x2a1   : > { %v4418_v53 = vld [vmem:[#allocation3 + $0x99] sm:$0xff]  ;;  %v4428_v30 = vld [vmem:[#allocation3 + $0xb1] sm:$0xff]  ;;  %v4438_v10 = vld [vmem:[#allocation3 + $0xc9] sm:$0xff] }
 0x2a2   : > { %v4430_v23 = vld [vmem:[#allocation3 + $0xaa] sm:$0xff]  ;;  %v4440_v59 = vld [vmem:[#allocation3 + $0xc2] sm:$0xff]  ;;  %v4462_v51 = vld [vmem:[#allocation3 + $0x39] sm:$0xff] }
 0x2a3   : > { %v4442_v44 = vld [vmem:[#allocation3 + $0xc1] sm:$0xff]  ;;  %v4450_v18 = vld [vmem:[#allocation3 + $0xca] sm:$0xff]  ;;  %v4464_v49 = vld [vmem:[#allocation3 + $0x19] sm:$0xff] }
 0x2a4   : > { %v1923_v20 = vld [vmem:[#allocation3 + $0x2] sm:$0xff]  ;;  %v1924_v12 = vld [vmem:[#allocation3 + $0xa] sm:$0xff]  ;;  %v4466_v1 = vld [vmem:[#allocation3 + $0x32] sm:$0xff] }
 0x2a5   : > { %2244 = vrot.lane.b32.xlu2 %v4378_v54, %s3363_s22  ;;  %2242 = vrot.lane.b32.xlu1 %v4380_v36, %s3363_s22  ;;  %v1907_v31 = vld [vmem:[#allocation3 + $0x1] sm:$0xff]  ;;  %v4456_v48 = vld [vmem:[#allocation3 + $0x31] sm:$0xff]  ;;  %v1908_v32 = vld [vmem:[#allocation3 + $0x9] sm:$0xff] }
 0x2a6   : > { %2240 = vrot.lane.b32.xlu0 %v4382_v56, %s3363_s22  ;;  %v4474_v50 = vld [vmem:[#allocation3 + $0x21] sm:$0xff]  ;;  %v4486_v60 = vld [vmem:[#allocation3 + $0x4a] sm:$0xff]  ;;  %v3202_v7 = vld [vmem:[%s5031_s5 + $0x18] sm:$0xf] }
 0x2a7   : > { %v4476_v43 = vld [vmem:[#allocation3 + $0x3a] sm:$0xff]  ;;  %v4488_v40 = vld [vmem:[#allocation3 + $0x22] sm:$0xff]  ;;  %3268 = vmatpush.msk.msra.mxu3 %vm1148_vm4, %v3202_v7  ;;  %3203 = vmatpush.msk.msra.mxu2 %vm1148_vm4, %v3202_v7  ;;  %v3201_v17 = vld [vmem:[%s5031_s5 + $0x10] sm:$0xff] }
 0x2a8   : > { %v4478_v37 = vld [vmem:[#allocation3 + $0x1a] sm:$0xff]  ;;  %v4490_v62 = vld [vmem:[#allocation3 + $0x49] sm:$0xff] }
 0x2a9   : > { %3269 = vmatpush.msra.mxu3 %v3201_v17  ;;  %2379 = vmatpush.msra.mxu2 %v3201_v17  ;;  %v4526_v33 = vld [vmem:[#allocation3 + $0x50] sm:$0xff]  ;;  %v2100_v46 = vld [vmem:[%s5031_s5 + $0x8] sm:$0xf]  ;;  %v4543_v47 = vld [vmem:[#allocation3 + $0x60] sm:$0xff] }
 0x2aa   : > { %v4558_v0 = vld [vmem:[#allocation3 + $0x68] sm:$0xff]  ;;  %v4572_v38 = vld [vmem:[#allocation3 + $0x78] sm:$0xff] }
 0x2ab   : > { %3220 = vmatpush.msk.msrb.mxu3 %vm1148_vm4, %v2100_v46 }
 0x2ad   : > { %2184 = vrot.lane.b32.xlu2 %v4390_v52, %s3362_s10  ;;  %2246 = vrot.lane.b32.xlu1 %v4392_v19, %s3363_s22 }
 0x2ae   : > { %2182 = vrot.lane.b32.xlu0 %v4394_v35, %s3362_s10 }
 0x2b5   : > { %2250 = vrot.lane.b32.xlu2 %v4402_v26, %s3363_s22  ;;  %2186 = vrot.lane.b32.xlu1 %v4404_v45, %s3362_s10 }
 0x2b6   : > { %2248 = vrot.lane.b32.xlu0 %v4406_v28, %s3363_s22 }
 0x2bd   : > { %2190 = vrot.lane.b32.xlu2 %v4414_v42, %s3362_s10  ;;  %2252 = vrot.lane.b32.xlu1 %v4416_v5, %s3363_s22 }
 0x2be   : > { %2188 = vrot.lane.b32.xlu0 %v4418_v53, %s3362_s10 }
 0x2c5   : > { %2256 = vrot.lane.b32.xlu2 %v4426_v41, %s3363_s22  ;;  %2192 = vrot.lane.b32.xlu1 %v4428_v30, %s3362_s10 }
 0x2c6   : > { %2254 = vrot.lane.b32.xlu0 %v4430_v23, %s3363_s22 }
 0x2cd   : > { %2196 = vrot.lane.b32.xlu2 %v4438_v10, %s3362_s10  ;;  %2258 = vrot.lane.b32.xlu1 %v4440_v59, %s3363_s22 }
 0x2ce   : > { %2194 = vrot.lane.b32.xlu0 %v4442_v44, %s3362_s10 }
 0x2d5   : > { %2019 = vrot.lane.b32.xlu2 %v1923_v20, %s3363_s22  ;;  %1955 = vrot.lane.b32.xlu1 %v1907_v31, %s3362_s10 }
 0x2d6   : > { %2260 = vrot.lane.b32.xlu0 %v4450_v18, %s3363_s22 }
 0x2dd   : > { %2021 = vrot.lane.b32.xlu2 %v1924_v12, %s3363_s22  ;;  %2610 = vrot.lane.b32.xlu1 %v4456_v48, %s3362_s10  ;;  %v4586_v12 = vld [vmem:[#allocation3 + $0x80] sm:$0xff] }
 0x2de   : > { %1957 = vrot.lane.b32.xlu0 %v1908_v32, %s3362_s10 }
 0x2e5   : > { %2612 = vrot.lane.b32.xlu2 %v4462_v51, %s3362_s10  ;;  %1959 = vrot.lane.b32.xlu1 %v4464_v49, %s3362_s10 }
 0x2e6   : > { %2674 = vrot.lane.b32.xlu0 %v4466_v1, %s3363_s22 }
 0x2ed   : > { %1961 = vrot.lane.b32.xlu2 %v4474_v50, %s3362_s10  ;;  %2676 = vrot.lane.b32.xlu1 %v4476_v43, %s3363_s22 }
 0x2ee   : > { %2023 = vrot.lane.b32.xlu0 %v4478_v37, %s3363_s22 }
 0x2f5   : > { %2678 = vrot.lane.b32.xlu2 %v4486_v60, %s3363_s22  ;;  %2025 = vrot.lane.b32.xlu1 %v4488_v40, %s3363_s22 }
 0x2f6   : > { %2614 = vrot.lane.b32.xlu0 %v4490_v62, %s3362_s10 }
 0x2f7   : > { %v2181_v25 = vpop.permute.xlu2 %2180 }
 0x2f8   : > { %v2285_v9 = vsel %vm521_vm3, %v4558_v0, %v2181_v25 }
 0x2fd   : > { %2027 = vrot.lane.b32.xlu2 %v4466_v1, %s3363_s22  ;;  %2616 = vrot.lane.b32.xlu1 %v4370_v58, %s3362_s10 }
 0x2fe   : > { %1963 = vrot.lane.b32.xlu0 %v4456_v48, %s3362_s10 }
 0x2ff   : > { %v2245_v29 = vpop.permute.xlu2 %2244 }
 0x300   : > { %v2301_v61 = vsel %vm800_vm6, %v2285_v9, %v2245_v29  ;;  %v4607_v29 = vld [vmem:[#allocation3 + $0x90] sm:$0xff] }
 0x305   : > { %2618 = vrot.lane.b32.xlu2 %v4368_v39, %s3362_s10  ;;  %1965 = vrot.lane.b32.xlu1 %v4462_v51, %s3362_s10 }
 0x306   : > { %2680 = vrot.lane.b32.xlu0 %v4382_v56, %s3363_s22 }
 0x307   : > { %v2185_v27 = vpop.permute.xlu2 %2184 }
 0x30d   : > { %1967 = vrot.lane.b32.xlu2 %v4490_v62, %s3362_s10  ;;  %2682 = vrot.lane.b32.xlu1 %v4380_v36, %s3363_s22 }
 0x30e   : > { %2029 = vrot.lane.b32.xlu0 %v4476_v43, %s3363_s22 }
 0x30f   : > { %v4524_v24 = vpop.permute.xlu2 %2250  ;;  %v2179_v3 = vpop.permute.xlu1 %2178 }
 0x310   : > { %v2177_v63 = vpop.permute.xlu0 %2176  ;;  %v2284_v22 = vsel %vm521_vm3, %v4543_v47, %v2179_v3 }
 0x311   : > { %v2283_v55 = vsel %vm521_vm3, %v4526_v33, %v2177_v63 }
 0x315   : > { %2684 = vrot.lane.b32.xlu2 %v4378_v54, %s3363_s22  ;;  %2031 = vrot.lane.b32.xlu1 %v4486_v60, %s3363_s22 }
 0x316   : > { %2620 = vrot.lane.b32.xlu0 %v4366_v16, %s3362_s10 }
 0x317   : > { %v4534_v13 = vpop.permute.xlu2 %2190  ;;  %v2243_v21 = vpop.permute.xlu1 %2242 }
 0x318   : > { %v2241_v34 = vpop.permute.xlu0 %2240  ;;  %v2300_v2 = vsel %vm800_vm6, %v2284_v22, %v2243_v21 }
 0x319   : > { %v2299_v14 = vsel %vm800_vm6, %v2283_v55, %v2241_v34  ;;  %v4623_v34 = vld [vmem:[#allocation3 + $0x98] sm:$0xff] }
 0x31a   : > { %3209 = vmatmul.msk.f32.vlgmr.msra.gmra.mxu3 %vm1087_vm5, %v2299_v14 }
 0x31d   : > { %2033 = vrot.lane.b32.xlu2 %v4382_v56, %s3363_s22  ;;  %2622 = vrot.lane.b32.xlu1 %v4394_v35, %s3362_s10 }
 0x31e   : > { %1969 = vrot.lane.b32.xlu0 %v4370_v58, %s3362_s10 }
 0x31f   : > { %v4554_v8 = vpop.permute.xlu2 %2256  ;;  %v2247_v6 = vpop.permute.xlu1 %2246 }
 0x320   : > { %v2183_v57 = vpop.permute.xlu0 %2182 }
 0x322   : > { %3210 = vmatmul.msk.f32.gmra.mxu3 %vm1087_vm5, %v2300_v2 }
 0x325   : > { %2624 = vrot.lane.b32.xlu2 %v4390_v52, %s3362_s10  ;;  %1971 = vrot.lane.b32.xlu1 %v4368_v39, %s3362_s10  ;;  %v2286_v39 = vsel %vm521_vm3, %v4572_v38, %v2183_v57 }
 0x326   : > { %2686 = vrot.lane.b32.xlu0 %v4392_v19, %s3363_s22  ;;  %v2302_v31 = vsel %vm800_vm6, %v2286_v39, %v2247_v6  ;;  %v4637_v6 = vld [vmem:[#allocation3 + $0xa8] sm:$0xff] }
 0x327   : > { %v4568_v15 = vpop.permute.xlu2 %2196  ;;  %v2187_v4 = vpop.permute.xlu1 %2186 }
 0x328   : > { %v2249_v11 = vpop.permute.xlu0 %2248 }
 0x32a   : > { %3211 = vmatmul.msk.f32.gmra.mxu3 %vm1087_vm5, %v2301_v61 }
 0x32d   : > { %1973 = vrot.lane.b32.xlu2 %v4366_v16, %s3362_s10  ;;  %2688 = vrot.lane.b32.xlu1 %v4406_v28, %s3363_s22  ;;  %v2287_v16 = vsel %vm521_vm3, %v4586_v12, %v2185_v27  ;;  %v2288_v27 = vsel %vm521_vm3, %v4607_v29, %v2187_v4  ;;  %v4650_v4 = vld [vmem:[#allocation3 + $0xb0] sm:$0xff] }
 0x32e   : > { %2035 = vrot.lane.b32.xlu0 %v4380_v36, %s3363_s22  ;;  %v3238_v36 = vld [vmem:[%s5031_s5 + $0x28] sm:$0xf]  ;;  %v2303_v17 = vsel %vm800_vm6, %v2287_v16, %v2249_v11  ;;  %v2304_v55 = vsel %vm800_vm6, %v2288_v27, %v4524_v24 }
 0x32f   : > { %v2253_v58 = vpop.permute.xlu1 %2252  ;;  %v4582_v56 = vpop.permute.xlu2 %2019  ;;  %3239 = vmatpush.msk.msrb.mxu0 %vm1148_vm4, %v3238_v36 }
 0x330   : > { %v2189_v20 = vpop.permute.xlu0 %2188 }
 0x332   : > { %3212 = vmatmul.msk.f32.gmra.mxu3 %vm1087_vm5, %v2302_v31 }
 0x335   : > { %2690 = vrot.lane.b32.xlu2 %v4402_v26, %s3363_s22  ;;  %2037 = vrot.lane.b32.xlu1 %v4378_v54, %s3363_s22  ;;  %v3237_v54 = vld [vmem:[%s5031_s5 + $0x20] sm:$0xff] }
 0x336   : > { %2626 = vrot.lane.b32.xlu0 %v4404_v45, %s3362_s10  ;;  %2823 = vmatpush.msrb.mxu0 %v3237_v54 }
 0x337   : > { %v2193_v32 = vpop.permute.xlu1 %2192  ;;  %v4599_v7 = vpop.permute.xlu2 %2021 }
 0x338   : > { %v2255_v25 = vpop.permute.xlu0 %2254 }
 0x33a   : > { %3213 = vmatmul.msk.f32.gmra.mxu3 %vm1087_vm5, %v2303_v17  ;;  %v4700_v17 = vld [vmem:[#allocation3 + $0x48] sm:$0xff] }
 0x33d   : > { %2039 = vrot.lane.b32.xlu2 %v4392_v19, %s3363_s22  ;;  %2628 = vrot.lane.b32.xlu1 %v4418_v53, %s3362_s10  ;;  %v2099_v19 = vld [vmem:[%s5031_s5] sm:$0xff] }
 0x33e   : > { %1975 = vrot.lane.b32.xlu0 %v4394_v35, %s3362_s10  ;;  %2495 = vmatpush.msrb.mxu3 %v2099_v19  ;;  %v2289_v35 = vsel %vm521_vm3, %v4623_v34, %v2189_v20  ;;  %v4669_v20 = vld [vmem:[#allocation3 + $0x38] sm:$0xff] }
 0x33f   : > { %v2259_v3 = vpop.permute.xlu1 %2258  ;;  %v2613_v63 = vpop.permute.xlu2 %2612  ;;  %v2305_v22 = vsel %vm800_vm6, %v2289_v35, %v2253_v58 }
 0x340   : > { %v2195_v21 = vpop.permute.xlu0 %2194  ;;  %v2723_v31 = vsel %vm521_vm3, %v4669_v20, %v2613_v63 }
 0x342   : > { %3214 = vmatmul.msk.f32.gmra.mxu3 %vm1087_vm5, %v2304_v55  ;;  %v1891_v55 = vld [vmem:[#allocation3] sm:$0xff] }
 0x345   : > { %2166 = vrot.lane.b32.xlu2 %v4464_v49, %s3362_s10  ;;  %1977 = vrot.lane.b32.xlu1 %v4390_v52, %s3362_s10  ;;  %v2290_v52 = vsel %vm521_vm3, %v4637_v6, %v4534_v13 }
 0x346   : > { %2692 = vrot.lane.b32.xlu0 %v4416_v5, %s3363_s22  ;;  %v2306_v9 = vsel %vm800_vm6, %v2290_v52, %v2255_v25  ;;  %v1892_v52 = vld [vmem:[#allocation3 + $0x8] sm:$0xff] }
 0x347   : > { %v4633_v24 = vpop.permute.xlu2 %1961  ;;  %v1956_v14 = vpop.permute.xlu1 %1955 }
 0x348   : > { %v2261_v46 = vpop.permute.xlu0 %2260 }
 0x34a   : > { %3215 = vmatmul.msk.f32.gmra.mxu3 %vm1087_vm5, %v2305_v22 }
 0x34d   : > { %2230 = vrot.lane.b32.xlu2 %v4478_v37, %s3363_s22  ;;  %2041 = vrot.lane.b32.xlu1 %v4406_v28, %s3363_s22  ;;  %v4652_v37 = vld [vmem:[#allocation3 + $0x30] sm:$0xff]  ;;  %v2291_v28 = vsel %vm521_vm3, %v4650_v4, %v2193_v32 }
 0x34e   : > { %2630 = vrot.lane.b32.xlu0 %v4414_v42, %s3362_s10  ;;  %v2307_v58 = vsel %vm800_vm6, %v2291_v28, %v4554_v8 }
 0x34f   : > { %v2679_v49 = vpop.permute.xlu2 %2678  ;;  %v2611_v57 = vpop.permute.xlu1 %2610 }
 0x350   : > { %v1958_v2 = vpop.permute.xlu0 %1957  ;;  %v2722_v13 = vsel %vm521_vm3, %v4652_v37, %v2611_v57 }
 0x352   : > { %3216 = vmatmul.msk.f32.gmra.mxu3 %vm1087_vm5, %v2306_v9 }
 0x355   : > { %2168 = vrot.lane.b32.xlu2 %v4474_v50, %s3362_s10  ;;  %1979 = vrot.lane.b32.xlu1 %v4404_v45, %s3362_s10  ;;  %v4673_v45 = vld [vmem:[#allocation3 + $0xc0] sm:$0xff] }
 0x356   : > { %2694 = vrot.lane.b32.xlu0 %v4430_v23, %s3363_s22  ;;  %v2292_v8 = vsel %vm521_vm3, %v4673_v45, %v2195_v21 }
 0x357   : > { %v4664_v11 = vpop.permute.xlu2 %2027  ;;  %v1960_v61 = vpop.permute.xlu1 %1959  ;;  %v2308_v54 = vsel %vm800_vm6, %v2292_v8, %v2259_v3 }
 0x358   : > { %v2675_v39 = vpop.permute.xlu0 %2674 }
 0x359   : > { %v2738_v50 = vsel %vm800_vm6, %v2722_v13, %v2675_v39 }
 0x35a   : > { %3217 = vmatmul.msk.f32.gmra.mxu3 %vm1087_vm5, %v2307_v58  ;;  %3240 = vmatmul.msk.f32.vlgmr.msrb.gmra.mxu0 %vm1087_vm5, %v2738_v50 }
 0x35d   : > { %2232 = vrot.lane.b32.xlu2 %v4488_v40, %s3363_s22  ;;  %2043 = vrot.lane.b32.xlu1 %v4402_v26, %s3363_s22  ;;  %v4689_v40 = vld [vmem:[#allocation3 + $0xc8] sm:$0xff] }
 0x35e   : > { %2632 = vrot.lane.b32.xlu0 %v4428_v30, %s3362_s10  ;;  %v2293_v26 = vsel %vm521_vm3, %v4689_v40, %v4568_v15  ;;  %v2067_v15 = vsel %vm521_vm3, %v1891_v55, %v1956_v14 }
 0x35f   : > { %v2619_v16 = vpop.permute.xlu2 %2618  ;;  %v2677_v36 = vpop.permute.xlu1 %2676  ;;  %v2083_v22 = vsel %vm800_vm6, %v2067_v15, %v4582_v56 }
 0x360   : > { %v2024_v32 = vpop.permute.xlu0 %2023  ;;  %v2739_v25 = vsel %vm800_vm6, %v2723_v31, %v2677_v36  ;;  %v2726_v57 = vsel %vm521_vm3, %v4543_v47, %v2619_v16  ;;  %v2577_v36 = vld [vmem:[#allocation3 + $0xe1] sm:$0xff] }
 0x362   : > { %3218 = vmatmul.msk.f32.gmra.mxu3 %vm1087_vm5, %v2308_v54  ;;  %3241 = vmatmul.msk.f32.gmra.mxu0 %vm1087_vm5, %v2739_v25 }
 0x365   : > { %2170 = vrot.lane.b32.xlu2 %v4456_v48, %s3362_s10  ;;  %1981 = vrot.lane.b32.xlu1 %v4418_v53, %s3362_s10  ;;  %v2309_v48 = vsel %vm800_vm6, %v2293_v26, %v2261_v46 }
 0x366   : > { %2696 = vrot.lane.b32.xlu0 %v4426_v41, %s3363_s22 }
 0x367   : > { %v4702_v27 = vpop.permute.xlu2 %1967  ;;  %v2026_v3 = vpop.permute.xlu1 %2025 }
 0x368   : > { %v2615_v63 = vpop.permute.xlu0 %2614 }
 0x369   : > { %v2724_v21 = vsel %vm521_vm3, %v4700_v17, %v2615_v63 }
 0x36a   : > { %3219 = vmatmul.msk.f32.gmra.mxu3 %vm1087_vm5, %v2309_v48  ;;  %v2740_v53 = vsel %vm800_vm6, %v2724_v21, %v2679_v49 }
 0x36b   : > { %3242 = vmatmul.msk.f32.gmra.mxu0 %vm1087_vm5, %v2740_v53  ;;  %v2073_v53 = vsel %vm521_vm3, %v4700_v17, %v4702_v27 }
 0x36d   : > { %2234 = vrot.lane.b32.xlu2 %v4466_v1, %s3363_s22  ;;  %2045 = vrot.lane.b32.xlu1 %v4416_v5, %s3363_s22  ;;  %v2068_v5 = vsel %vm521_vm3, %v1892_v52, %v1958_v2 }
 0x36e   : > { %2634 = vrot.lane.b32.xlu0 %v4442_v44, %s3362_s10  ;;  %v2084_v49 = vsel %vm800_vm6, %v2068_v5, %v4599_v7 }
 0x36f   : > { %v2685_v19 = vpop.permute.xlu2 %2684  ;;  %v2617_v35 = vpop.permute.xlu1 %2616 }
 0x370   : > { %v1964_v46 = vpop.permute.xlu0 %1963  ;;  %v2725_v44 = vsel %vm521_vm3, %v4526_v33, %v2617_v35 }
 0x372   : > { %3221 = vmatmul.msk.f32.vlgmr.msrb.gmra.mxu3 %vm1087_vm5, %v2083_v22 }
 0x375   : > { %2172 = vrot.lane.b32.xlu2 %v4462_v51, %s3362_s10  ;;  %1983 = vrot.lane.b32.xlu1 %v4414_v42, %s3362_s10  ;;  %v1893_v42 = vld [vmem:[#allocation3 + $0x18] sm:$0xff] }
 0x376   : > { %2698 = vrot.lane.b32.xlu0 %v4440_v59, %s3363_s22  ;;  %v2069_v59 = vsel %vm521_vm3, %v1893_v42, %v1960_v61 }
 0x377   : > { %v4729_v1 = vpop.permute.xlu2 %2033  ;;  %v1966_v56 = vpop.permute.xlu1 %1965  ;;  %v2085_v13 = vsel %vm800_vm6, %v2069_v59, %v2024_v32  ;;  %v2592_v32 = vld [vmem:[#allocation3 + $0xda] sm:$0xff] }
 0x378   : > { %v2681_v14 = vpop.permute.xlu0 %2680 }
 0x379   : > { %v2741_v51 = vsel %vm800_vm6, %v2725_v44, %v2681_v14 }
 0x37a   : > { %3222 = vmatmul.msk.f32.gmra.mxu3 %vm1087_vm5, %v2084_v49  ;;  %3243 = vmatmul.msk.f32.gmra.mxu0 %vm1087_vm5, %v2741_v51 }
 0x37d   : > { %2236 = vrot.lane.b32.xlu2 %v4476_v43, %s3363_s22  ;;  %2047 = vrot.lane.b32.xlu1 %v4430_v23, %s3363_s22  ;;  %v4749_v43 = vld [vmem:[#allocation3 + $0x20] sm:$0xff] }
 0x37e   : > { %2636 = vrot.lane.b32.xlu0 %v4438_v10, %s3362_s10  ;;  %v2070_v23 = vsel %vm521_vm3, %v4749_v43, %v4633_v24 }
 0x37f   : > { %v2625_v7 = vpop.permute.xlu2 %2624  ;;  %v2683_v2 = vpop.permute.xlu1 %2682  ;;  %v2086_v50 = vsel %vm800_vm6, %v2070_v23, %v2026_v3 }
 0x380   : > { %v2030_v9 = vpop.permute.xlu0 %2029  ;;  %v2742_v28 = vsel %vm800_vm6, %v2726_v57, %v2683_v2  ;;  %v2729_v21 = vsel %vm521_vm3, %v4586_v12, %v2625_v7 }
 0x382   : > { %3223 = vmatmul.msk.f32.gmra.mxu3 %vm1087_vm5, %v2085_v13  ;;  %3244 = vmatmul.msk.f32.gmra.mxu0 %vm1087_vm5, %v2742_v28 }
 0x385   : > { %2174 = vrot.lane.b32.xlu2 %v4490_v62, %s3362_s10  ;;  %1985 = vrot.lane.b32.xlu1 %v4428_v30, %s3362_s10  ;;  %v2576_v62 = vld [vmem:[#allocation3 + $0xd9] sm:$0xff] }
 0x386   : > { %2700 = vrot.lane.b32.xlu0 %v4450_v18, %s3363_s22  ;;  %v2071_v18 = vsel %vm521_vm3, %v4652_v37, %v1964_v46 }
 0x387   : > { %v4760_v10 = vpop.permute.xlu2 %1973  ;;  %v2032_v61 = vpop.permute.xlu1 %2031  ;;  %v2087_v16 = vsel %vm800_vm6, %v2071_v18, %v4664_v11 }
 0x388   : > { %v2621_v39 = vpop.permute.xlu0 %2620  ;;  %v2089_v46 = vsel %vm800_vm6, %v2073_v53, %v2032_v61  ;;  %v2076_v13 = vsel %vm521_vm3, %v4558_v0, %v4760_v10 }
 0x389   : > { %v2727_v58 = vsel %vm521_vm3, %v4558_v0, %v2621_v39 }
 0x38a   : > { %3224 = vmatmul.msk.f32.gmra.mxu3 %vm1087_vm5, %v2086_v50  ;;  %v2743_v30 = vsel %vm800_vm6, %v2727_v58, %v2685_v19 }
 0x38b   : > { %3245 = vmatmul.msk.f32.gmra.mxu0 %vm1087_vm5, %v2743_v30 }
 0x38d   : > { %2238 = vrot.lane.b32.xlu2 %v4486_v60, %s3363_s22  ;;  %2049 = vrot.lane.b32.xlu1 %v4426_v41, %s3363_s22  ;;  %v2593_v60 = vld [vmem:[#allocation3 + $0xe2] sm:$0xff]  ;;  %v2072_v41 = vsel %vm521_vm3, %v4669_v20, %v1966_v56 }
 0x38e   : > { %2638 = vrot.lane.b32.xlu0 %v2576_v62, %s3362_s10  ;;  %v2088_v3 = vsel %vm800_vm6, %v2072_v41, %v2030_v9 }
 0x38f   : > { %v2691_v24 = vpop.permute.xlu2 %2690  ;;  %v2623_v31 = vpop.permute.xlu1 %2622 }
 0x390   : > { %v1970_v8 = vpop.permute.xlu0 %1969  ;;  %v2728_v25 = vsel %vm521_vm3, %v4572_v38, %v2623_v31 }
 0x391   : > { %v2074_v5 = vsel %vm521_vm3, %v4526_v33, %v1970_v8 }
 0x392   : > { %3225 = vmatmul.msk.f32.gmra.mxu3 %vm1087_vm5, %v2087_v16  ;;  %v2090_v51 = vsel %vm800_vm6, %v2074_v5, %v4729_v1 }
 0x395   : > { %2640 = vrot.lane.b32.xlu1 %v2577_v36, %s3362_s10  ;;  %2704 = vrot.lane.b32.xlu2 %v2593_v60, %s3363_s22 }
 0x396   : > { %2702 = vrot.lane.b32.xlu0 %v2592_v32, %s3363_s22 }
 0x397   : > { %v2040_v54 = vpop.permute.xlu2 %2039  ;;  %v1972_v26 = vpop.permute.xlu1 %1971 }
 0x398   : > { %v2687_v11 = vpop.permute.xlu0 %2686  ;;  %v2075_v57 = vsel %vm521_vm3, %v4543_v47, %v1972_v26 }
 0x399   : > { %v2744_v63 = vsel %vm800_vm6, %v2728_v25, %v2687_v11 }
 0x39a   : > { %3226 = vmatmul.msk.f32.gmra.mxu3 %vm1087_vm5, %v2088_v3  ;;  %3246 = vmatmul.msk.f32.gmra.mxu0 %vm1087_vm5, %v2744_v63 }
 0x39d   : > { %v4791_v48 = vpop.f32.mrf.mxu3 }
 0x39f   : > { %v2167_v55 = vpop.permute.xlu2 %2166  ;;  %v2689_v15 = vpop.permute.xlu1 %2688 }
 0x3a0   : > { %v2036_v19 = vpop.permute.xlu0 %2035  ;;  %v2745_v35 = vsel %vm800_vm6, %v2729_v21, %v2689_v15  ;;  %v2278_v22 = vsel %vm521_vm3, %v1893_v42, %v2167_v55 }
 0x3a1   : > { %v2091_v9 = vsel %vm800_vm6, %v2075_v57, %v2036_v19 }
 0x3a2   : > { %3227 = vmatmul.msk.f32.gmra.mxu3 %vm1087_vm5, %v2089_v46  ;;  %3247 = vmatmul.msk.f32.gmra.mxu0 %vm1087_vm5, %v2745_v35 }
 0x3a5   : > { %v4801_v52 = vpop.f32.mrf.mxu3 }
 0x3a7   : > { %v2231_v44 = vpop.permute.xlu2 %2230  ;;  %v2038_v27 = vpop.permute.xlu1 %2037 }
 0x3a8   : > { %v2627_v56 = vpop.permute.xlu0 %2626  ;;  %v2294_v14 = vsel %vm800_vm6, %v2278_v22, %v2231_v44  ;;  %v2092_v50 = vsel %vm800_vm6, %v2076_v13, %v2038_v27 }
 0x3a9   : > { %v2730_v49 = vsel %vm521_vm3, %v4607_v29, %v2627_v56  ;;  %3204 = vmatmul.msk.f32.vlgmr.msra.gmra.mxu2 %vm1087_vm5, %v2294_v14 }
 0x3aa   : > { %3228 = vmatmul.msk.f32.gmra.mxu3 %vm1087_vm5, %v2090_v51  ;;  %v2746_v42 = vsel %vm800_vm6, %v2730_v49, %v2691_v24 }
 0x3ab   : > { %3248 = vmatmul.msk.f32.gmra.mxu0 %vm1087_vm5, %v2746_v42 }
 0x3ad   : > { %v4814_v33 = vpop.f32.mrf.mxu3 }
 0x3af   : > { %v2169_v59 = vpop.permute.xlu2 %2168  ;;  %v2629_v7 = vpop.permute.xlu1 %2628 }
 0x3b0   : > { %v1976_v2 = vpop.permute.xlu0 %1975  ;;  %v2279_v1 = vsel %vm521_vm3, %v4749_v43, %v2169_v59  ;;  %v2731_v23 = vsel %vm521_vm3, %v4623_v34, %v2629_v7 }
 0x3b1   : > { %v2077_v0 = vsel %vm521_vm3, %v4572_v38, %v1976_v2 }
 0x3b2   : > { %3229 = vmatmul.msk.f32.gmra.mxu3 %vm1087_vm5, %v2091_v9  ;;  %v2093_v24 = vsel %vm800_vm6, %v2077_v0, %v2040_v54 }
 0x3b5   : > { %v4822_v28 = vpop.f32.mrf.mxu3 }
 0x3b7   : > { %v2233_v47 = vpop.permute.xlu2 %2232  ;;  %v1978_v61 = vpop.permute.xlu1 %1977 }
 0x3b8   : > { %v2693_v39 = vpop.permute.xlu0 %2692  ;;  %v2295_v58 = vsel %vm800_vm6, %v2279_v1, %v2233_v47  ;;  %v2078_v16 = vsel %vm521_vm3, %v4586_v12, %v1978_v61 }
 0x3b9   : > { %3205 = vmatmul.msk.f32.gmra.mxu2 %vm1087_vm5, %v2295_v58  ;;  %v2747_v43 = vsel %vm800_vm6, %v2731_v23, %v2693_v39 }
 0x3ba   : > { %3230 = vmatmul.msk.f32.gmra.mxu3 %vm1087_vm5, %v2092_v50  ;;  %3249 = vmatmul.msk.f32.gmra.mxu0 %vm1087_vm5, %v2747_v43 }
 0x3bd   : > { %v4835_v30 = vpop.f32.mrf.mxu3 }
 0x3bf   : > { %v2171_v10 = vpop.permute.xlu2 %2170  ;;  %v2042_v62 = vpop.permute.xlu1 %2041 }
 0x3c0   : > { %v2631_v18 = vpop.permute.xlu0 %2630  ;;  %v2280_v31 = vsel %vm521_vm3, %v4652_v37, %v2171_v10  ;;  %v2094_v25 = vsel %vm800_vm6, %v2078_v16, %v2042_v62 }
 0x3c1   : > { %v2732_v38 = vsel %vm521_vm3, %v4637_v6, %v2631_v18 }
 0x3c2   : > { %3231 = vmatmul.msk.f32.gmra.mxu3 %vm1087_vm5, %v2093_v24 }
 0x3c5   : > { %v4843_v8 = vpop.f32.mrf.mxu3 }
 0x3c7   : > { %v2235_v36 = vpop.permute.xlu2 %2234  ;;  %v1980_v32 = vpop.permute.xlu1 %1979 }
 0x3c8   : > { %v2695_v60 = vpop.permute.xlu0 %2694  ;;  %v2296_v41 = vsel %vm800_vm6, %v2280_v31, %v2235_v36  ;;  %v2079_v12 = vsel %vm521_vm3, %v4607_v29, %v1980_v32 }
 0x3c9   : > { %3206 = vmatmul.msk.f32.gmra.mxu2 %vm1087_vm5, %v2296_v41  ;;  %v2748_v54 = vsel %vm800_vm6, %v2732_v38, %v2695_v60  ;;  %v2561_v38 = vld [vmem:[#allocation3 + $0xe0] sm:$0xff] }
 0x3ca   : > { %3232 = vmatmul.msk.f32.gmra.mxu3 %vm1087_vm5, %v2094_v25  ;;  %3250 = vmatmul.msk.f32.gmra.mxu0 %vm1087_vm5, %v2748_v54 }
 0x3cd   : > { %v4857_v37 = vpop.f32.mrf.mxu3 }
 0x3cf   : > { %v2173_v26 = vpop.permute.xlu2 %2172  ;;  %v2044_v11 = vpop.permute.xlu1 %2043 }
 0x3d0   : > { %v2633_v3 = vpop.permute.xlu0 %2632  ;;  %v2095_v63 = vsel %vm800_vm6, %v2079_v12, %v2044_v11  ;;  %v2281_v21 = vsel %vm521_vm3, %v4669_v20, %v2173_v26 }
 0x3d1   : > { %v2733_v15 = vsel %vm521_vm3, %v4650_v4, %v2633_v3 }
 0x3d2   : > { %3233 = vmatmul.msk.f32.gmra.mxu3 %vm1087_vm5, %v2095_v63 }
 0x3d5   : > { %v4863_v53 = vpop.f32.mrf.mxu3 }
 0x3d7   : > { %v2237_v55 = vpop.permute.xlu2 %2236  ;;  %v1982_v29 = vpop.permute.xlu1 %1981 }
 0x3d8   : > { %v2697_v19 = vpop.permute.xlu0 %2696  ;;  %v2297_v35 = vsel %vm800_vm6, %v2281_v21, %v2237_v55  ;;  %v2080_v20 = vsel %vm521_vm3, %v4623_v34, %v1982_v29  ;;  %v2825_v2 = vpop.f32.mrf.mxu0  ;;  %v4927_v21 = vld [vmem:[%s5032_s6] ss:$0 sm:$0xff] }
 0x3d9   : > { %3207 = vmatmul.msk.f32.gmra.mxu2 %vm1087_vm5, %v2297_v35  ;;  %v2749_v46 = vsel %vm800_vm6, %v2733_v15, %v2697_v19  ;;  %v2914_v15 = vld [vmem:[%s3460_s18 + $0x28] sm:$0xff] }
 0x3da   : > { %3251 = vmatmul.msk.f32.gmra.mxu0 %vm1087_vm5, %v2749_v46 }
 0x3dd   : > { %v4871_v22 = vpop.f32.mrf.mxu3 }
 0x3df   : > { %v2175_v5 = vpop.permute.xlu2 %2174  ;;  %v2046_v27 = vpop.permute.xlu1 %2045 }
 0x3e0   : > { %v2635_v44 = vpop.permute.xlu0 %2634  ;;  %v2096_v56 = vsel %vm800_vm6, %v2080_v20, %v2046_v27  ;;  %v2282_v14 = vsel %vm521_vm3, %v4700_v17, %v2175_v5  ;;  %v4893_v23 = vpop.f32.mrf.mxu0  ;;  %v2915_v5 = vld [vmem:[%s3460_s18 + $0x30] sm:$0xff] }
 0x3e1   : > { %3234 = vmatmul.msk.f32.gmra.mxu3 %vm1087_vm5, %v2096_v56  ;;  %v2734_v42 = vsel %vm521_vm3, %v4673_v45, %v2635_v44 }
 0x3e5   : > { %v4879_v49 = vpop.f32.mrf.mxu3 }
 0x3e7   : > { %v2239_v51 = vpop.permute.xlu2 %2238  ;;  %v1984_v34 = vpop.permute.xlu1 %1983 }
 0x3e8   : > { %v2699_v57 = vpop.permute.xlu0 %2698  ;;  %v2298_v59 = vsel %vm800_vm6, %v2282_v14, %v2239_v51  ;;  %v2081_v17 = vsel %vm521_vm3, %v4637_v6, %v1984_v34  ;;  %v4901_v6 = vpop.f32.mrf.mxu0  ;;  %v2909_v34 = vld [vmem:[%s3460_s18] sm:$0xff] }
 0x3e9   : > { %3208 = vmatmul.msk.f32.gmra.mxu2 %vm1087_vm5, %v2298_v59  ;;  %v2750_v7 = vsel %vm800_vm6, %v2734_v42, %v2699_v57 }
 0x3ea   : > { %3252 = vmatmul.msk.f32.gmra.mxu0 %vm1087_vm5, %v2750_v7 }
 0x3ed   : > { %v4887_v9 = vpop.f32.mrf.mxu3 }
 0x3ef   : > { %v2048_v13 = vpop.permute.xlu1 %2047  ;;  %v2705_v41 = vpop.permute.xlu2 %2704 }
 0x3f0   : > { %v2637_v1 = vpop.permute.xlu0 %2636  ;;  %v2097_v45 = vsel %vm800_vm6, %v2081_v17, %v2048_v13  ;;  %v2916_v17 = vld [vmem:[%s3460_s18 + $0x38] sm:$0xff] }
 0x3f1   : > { %3235 = vmatmul.msk.f32.gmra.mxu3 %vm1087_vm5, %v2097_v45  ;;  %v2735_v61 = vsel %vm521_vm3, %v4689_v40, %v2637_v1  ;;  %v2560_v40 = vld [vmem:[#allocation3 + $0xd8] sm:$0xff] }
 0x3f5   : > { %v2497_v47 = vpop.f32.mrf.mxu3 }
 0x3f7   : > { %v1986_v58 = vpop.permute.xlu1 %1985  ;;  %v4909_v31 = vpop.f32.mrf.mxu0 }
 0x3f8   : > { %v2701_v39 = vpop.permute.xlu0 %2700  ;;  %v2082_v0 = vsel %vm521_vm3, %v4650_v4, %v1986_v58 }
 0x3f9   : > { %v2751_v50 = vsel %vm800_vm6, %v2735_v61, %v2701_v39  ;;  %v2917_v39 = vld [vmem:[%s3460_s18 + $0x40] sm:$0xff] }
 0x3fa   : > { %3253 = vmatmul.msk.f32.gmra.mxu0 %vm1087_vm5, %v2751_v50 }
 0x3fd   : > { %v4899_v43 = vpop.f32.mrf.mxu3 }
 0x3ff   : > { %v2050_v62 = vpop.permute.xlu1 %2049  ;;  %v4918_v12 = vpop.f32.mrf.mxu0 }
 0x400   : > { %v2639_v10 = vpop.permute.xlu0 %2638  ;;  %v2098_v18 = vsel %vm800_vm6, %v2082_v0, %v2050_v62 }
 0x401   : > { %3236 = vmatmul.msk.f32.gmra.mxu3 %vm1087_vm5, %v2098_v18  ;;  %v2736_v16 = vsel %vm521_vm3, %v2560_v40, %v2639_v10 }
 0x405   : > { %v4907_v24 = vpop.f32.mrf.mxu3 }
 0x407   : > { %v2641_v60 = vpop.permute.xlu1 %2640 }
 0x408   : > { %v2703_v36 = vpop.permute.xlu0 %2702  ;;  %v2737_v4 = vsel %vm521_vm3, %v2561_v38, %v2641_v60  ;;  %v2840_v11 = vpop.f32.mrf.mxu0  ;;  %v2918_v38 = vld [vmem:[%s3460_s18 + $0x48] sm:$0xff] }
 0x409   : > { %v2752_v32 = vsel %vm800_vm6, %v2736_v16, %v2703_v36  ;;  %v2753_v54 = vsel %vm800_vm6, %v2737_v4, %v2705_v41  ;;  %v2910_v16 = vld [vmem:[%s3460_s18 + $0x8] sm:$0xff] }
 0x40a   : > { %3254 = vmatmul.msk.f32.gmra.mxu0 %vm1087_vm5, %v2752_v32 }
 0x40d   : > { %v4915_v25 = vpop.f32.mrf.mxu3 }
 0x412   : > { %3255 = vmatmul.msk.f32.gmra.mxu0 %vm1087_vm5, %v2753_v54 }
 0x415   : > { %v4921_v26 = vpop.f32.mrf.mxu3 }
 0x417   : > { %v2843_v29 = vpop.f32.mrf.mxu0 }
 0x41d   : > { %v2512_v3 = vpop.f32.mrf.mxu3 }
 0x41e   : > { %v2513_v63 = vadd.f32 %v2512_v3, %v4791_v48 }
 0x41f   : > { %v2846_v14 = vpop.f32.mrf.mxu0 }
 0x420   : > { %v2878_v55 = vadd.f32 %v2840_v11, %v2513_v63  ;;  %v2919_v11 = vld [vmem:[%s3460_s18 + $0x50] sm:$0xff] }
 0x422   : > { %v2898_v19 = vadd.f32 %v4927_v21, %v2878_v55 }
 0x424   : > { %v2930_v35 = vadd.f32 %v2914_v15, %v2898_v19 }
 0x425   : > { %v2515_v46 = vpop.f32.mrf.mxu3 }
 0x426   : > { %2946 = vst.msk [vmem:[%s3465_s21 + $0x28] sm:$0xff] %vm521_vm3, %v2930_v35  ;;  %v2516_v20 = vadd.f32 %v2515_v46, %v4801_v52 }
 0x428   : > { %v2879_v48 = vadd.f32 %v2843_v29, %v2516_v20  ;;  %v2911_v29 = vld [vmem:[%s3460_s18 + $0x10] sm:$0xff] }
 0x42a   : > { %v2899_v44 = vadd.f32 %v4927_v21, %v2879_v48 }
 0x42c   : > { %v2931_v27 = vadd.f32 %v2915_v5, %v2899_v44  ;;  %v2381_v56 = vpop.f32.mrf.mxu2 }
 0x42d   : > { %v2498_v51 = vadd.f32 %v2497_v47, %v2381_v56  ;;  %v2518_v42 = vpop.f32.mrf.mxu3 }
 0x42e   : > { %2947 = vst.msk [vmem:[%s3465_s21 + $0x30] sm:$0xff] %vm521_vm3, %v2931_v27  ;;  %v2519_v57 = vadd.f32 %v2518_v42, %v4814_v33  ;;  %v2849_v33 = vpop.f32.mrf.mxu0 }
 0x42f   : > { %v2873_v59 = vadd.f32 %v2825_v2, %v2498_v51  ;;  %v2912_v51 = vld [vmem:[%s3460_s18 + $0x18] sm:$0xff] }
 0x430   : > { %v2880_v7 = vadd.f32 %v2846_v14, %v2519_v57 }
 0x431   : > { %v2893_v52 = vadd.f32 %v4927_v21, %v2873_v59 }
 0x432   : > { %v2900_v1 = vadd.f32 %v4927_v21, %v2880_v7 }
 0x433   : > { %v2925_v13 = vadd.f32 %v2909_v34, %v2893_v52 }
 0x434   : > { %v2932_v45 = vadd.f32 %v2916_v17, %v2900_v1 }
 0x435   : > { %2941 = vst.msk [vmem:[%s3465_s21] sm:$0xff] %vm521_vm3, %v2925_v13  ;;  %v2521_v47 = vpop.f32.mrf.mxu3 }
 0x436   : > { %2948 = vst.msk [vmem:[%s3465_s21 + $0x38] sm:$0xff] %vm521_vm3, %v2932_v45  ;;  %v2522_v61 = vadd.f32 %v2521_v47, %v4822_v28  ;;  %v2913_v45 = vld [vmem:[%s3460_s18 + $0x20] sm:$0xff] }
 0x437   : > { %v2852_v40 = vpop.f32.mrf.mxu0 }
 0x438   : > { %v2881_v2 = vadd.f32 %v2849_v33, %v2522_v61 }
 0x43a   : > { %v2901_v58 = vadd.f32 %v4927_v21, %v2881_v2 }
 0x43c   : > { %v2933_v50 = vadd.f32 %v2917_v39, %v2901_v58  ;;  %v2384_v0 = vpop.f32.mrf.mxu2  ;;  %v2922_v58 = vld [vmem:[%s3460_s18 + $0x68] sm:$0xff] }
 0x43d   : > { %v2501_v10 = vadd.f32 %v4899_v43, %v2384_v0  ;;  %v2524_v62 = vpop.f32.mrf.mxu3 }
 0x43e   : > { %2949 = vst.msk [vmem:[%s3465_s21 + $0x40] sm:$0xff] %vm521_vm3, %v2933_v50  ;;  %v2525_v18 = vadd.f32 %v2524_v62, %v4835_v30 }
 0x43f   : > { %v2874_v28 = vadd.f32 %v4893_v23, %v2501_v10 }
 0x440   : > { %v2882_v36 = vadd.f32 %v2852_v40, %v2525_v18  ;;  %v2923_v18 = vld [vmem:[%s3460_s18 + $0x70] sm:$0xff] }
 0x441   : > { %v2894_v32 = vadd.f32 %v4927_v21, %v2874_v28 }
 0x442   : > { %v2902_v60 = vadd.f32 %v4927_v21, %v2882_v36 }
 0x443   : > { %v2926_v4 = vadd.f32 %v2910_v16, %v2894_v32 }
 0x444   : > { %v2934_v43 = vadd.f32 %v2918_v38, %v2902_v60  ;;  %v2924_v38 = vld [vmem:[%s3460_s18 + $0x78] sm:$0xff] }
 0x445   : > { %2942 = vst.msk [vmem:[%s3465_s21 + $0x8] sm:$0xff] %vm521_vm3, %v2926_v4  ;;  %v2527_v41 = vpop.f32.mrf.mxu3 }
 0x446   : > { %2950 = vst.msk [vmem:[%s3465_s21 + $0x48] sm:$0xff] %vm521_vm3, %v2934_v43  ;;  %v2528_v30 = vadd.f32 %v2527_v41, %v4843_v8 }
 0x447   : > { %v2855_v23 = vpop.f32.mrf.mxu0 }
 0x448   : > { %v2883_v54 = vadd.f32 %v2855_v23, %v2528_v30 }
 0x44a   : > { %v2903_v3 = vadd.f32 %v4927_v21, %v2883_v54 }
 0x44c   : > { %v2935_v63 = vadd.f32 %v2919_v11, %v2903_v3  ;;  %v2387_v55 = vpop.f32.mrf.mxu2 }
 0x44d   : > { %v2504_v15 = vadd.f32 %v4907_v24, %v2387_v55  ;;  %v2530_v46 = vpop.f32.mrf.mxu3  ;;  %v2920_v24 = vld [vmem:[%s3460_s18 + $0x58] sm:$0xff] }
 0x44e   : > { %2951 = vst.msk [vmem:[%s3465_s21 + $0x50] sm:$0xff] %vm521_vm3, %v2935_v63  ;;  %v2531_v20 = vadd.f32 %v2530_v46, %v4857_v37 }
 0x44f   : > { %v2875_v19 = vadd.f32 %v4901_v6, %v2504_v15 }
 0x451   : > { %v2895_v35 = vadd.f32 %v4927_v21, %v2875_v19 }
 0x453   : > { %v2927_v8 = vadd.f32 %v2911_v29, %v2895_v35 }
 0x455   : > { %2943 = vst.msk [vmem:[%s3465_s21 + $0x10] sm:$0xff] %vm521_vm3, %v2927_v8  ;;  %v2533_v37 = vpop.f32.mrf.mxu3 }
 0x456   : > { %v2534_v59 = vadd.f32 %v2533_v37, %v4863_v53 }
 0x457   : > { %v2858_v48 = vpop.f32.mrf.mxu0 }
 0x458   : > { %v2884_v5 = vadd.f32 %v2858_v48, %v2531_v20 }
 0x45a   : > { %v2904_v44 = vadd.f32 %v4927_v21, %v2884_v5 }
 0x45c   : > { %v2936_v27 = vadd.f32 %v2920_v24, %v2904_v44  ;;  %v2390_v56 = vpop.f32.mrf.mxu2 }
 0x45d   : > { %v2507_v6 = vadd.f32 %v4915_v25, %v2390_v56  ;;  %v2921_v25 = vld [vmem:[%s3460_s18 + $0x60] sm:$0xff] }
 0x45e   : > { %2952 = vst.msk [vmem:[%s3465_s21 + $0x58] sm:$0xff] %vm521_vm3, %v2936_v27 }
 0x45f   : > { %v2876_v14 = vadd.f32 %v4909_v31, %v2507_v6 }
 0x461   : > { %v2896_v42 = vadd.f32 %v4927_v21, %v2876_v14 }
 0x463   : > { %v2928_v57 = vadd.f32 %v2912_v51, %v2896_v42 }
 0x464   : > { %v2536_v53 = vpop.f32.mrf.mxu3 }
 0x465   : > { %2944 = vst.msk [vmem:[%s3465_s21 + $0x18] sm:$0xff] %vm521_vm3, %v2928_v57  ;;  %v2537_v33 = vadd.f32 %v2536_v53, %v4871_v22 }
 0x467   : > { %v2861_v34 = vpop.f32.mrf.mxu0 }
 0x468   : > { %v2885_v7 = vadd.f32 %v2861_v34, %v2534_v59 }
 0x46a   : > { %v2905_v52 = vadd.f32 %v4927_v21, %v2885_v7 }
 0x46c   : > { %v2937_v17 = vadd.f32 %v2921_v25, %v2905_v52  ;;  %v2393_v31 = vpop.f32.mrf.mxu2 }
 0x46d   : > { %v2510_v1 = vadd.f32 %v4921_v26, %v2393_v31 }
 0x46e   : > { %2953 = vst.msk [vmem:[%s3465_s21 + $0x60] sm:$0xff] %vm521_vm3, %v2937_v17 }
 0x46f   : > { %v2877_v13 = vadd.f32 %v4918_v12, %v2510_v1 }
 0x471   : > { %v2897_v47 = vadd.f32 %v4927_v21, %v2877_v13 }
 0x473   : > { %v2929_v61 = vadd.f32 %v2913_v45, %v2897_v47 }
 0x474   : > { %v2539_v12 = vpop.f32.mrf.mxu3 }
 0x475   : > { %2945 = vst.msk [vmem:[%s3465_s21 + $0x20] sm:$0xff] %vm521_vm3, %v2929_v61  ;;  %v2540_v0 = vadd.f32 %v2539_v12, %v4879_v49 }
 0x477   : > { %v2864_v2 = vpop.f32.mrf.mxu0 }
 0x478   : > { %v2886_v39 = vadd.f32 %v2864_v2, %v2537_v33 }
 0x47a   : > { %v2906_v26 = vadd.f32 %v4927_v21, %v2886_v39 }
 0x47c   : > { %v2938_v50 = vadd.f32 %v2922_v58, %v2906_v26 }
 0x47e   : > { %2954 = vst.msk [vmem:[%s3465_s21 + $0x68] sm:$0xff] %vm521_vm3, %v2938_v50 }
 0x484   : > { %v2542_v22 = vpop.f32.mrf.mxu3 }
 0x485   : > { %v2543_v16 = vadd.f32 %v2542_v22, %v4887_v9 }
 0x487   : > { %v2867_v10 = vpop.f32.mrf.mxu0 }
 0x488   : > { %v2887_v62 = vadd.f32 %v2867_v10, %v2540_v0 }
 0x48a   : > { %v2907_v40 = vadd.f32 %v4927_v21, %v2887_v62 }
 0x48c   : > { %v2939_v28 = vadd.f32 %v2923_v18, %v2907_v40 }
 0x48e   : > { %2955 = vst.msk [vmem:[%s3465_s21 + $0x70] sm:$0xff] %vm521_vm3, %v2939_v28 }
 0x48f   : > { %v2870_v36 = vpop.f32.mrf.mxu0 }
 0x490   : > { %v2888_v32 = vadd.f32 %v2870_v36, %v2543_v16 }
 0x492   : > { %v2908_v60 = vadd.f32 %v4927_v21, %v2888_v32 }
 0x494   : > { %v2940_v4 = vadd.f32 %v2924_v38, %v2908_v60 }
 0x496   : > { %2956 = vst.msk [vmem:[%s3465_s21 + $0x78] sm:$0xff] %vm521_vm3, %v2940_v4 }
 0x497 PF: > { %s17_s28 = sadd.s32 1, %s3357_s28   ;;  %s5034_s24 = smov %s3349_s26 }
 0x498   : > { %p14_p1 = scmp.ge.s32.totalorder %s17_s28, 6   ;;  %s5035_s25 = smov %s3353_s27 }
 0x499   : > { %s5036_s26 = smov %s5039_s29  ;;  %s5037_s27 = smov %s5043_s30 }
 0x49a   :  { %16 = sbr.rel (!%p14_p1) target bundleno = 3 (0x3), region = 119 }

</bundles_post_ra>
